<compile_context>
chip_gen: v7x
topology: tpu7x:2x2x1
jax: 0.10.0
libtpu: 0.0.40
codegen_flags: <defaults>
</compile_context>

<pallas_src>
import jax
import jax.numpy as jnp
from jax.experimental import pallas as pl
from jax.experimental.pallas import tpu as pltpu

_MIB = 1024 * 1024


def _round_up(x, m):
    return ((x + m - 1) // m) * m


def _physical_vmem_bytes(default=64 * _MIB):
    """Best-effort query of per-core VMEM; falls back to the smallest gen (v7x)."""
    try:
        info = pltpu.get_tpu_info()
        for attr in ("vmem_capacity_bytes", "vmem_size_bytes", "vmem_bytes"):
            v = getattr(info, attr, None)
            if v:
                return int(v)
    except Exception:
        pass
    return default


def _divisors_desc(n):
    return [d for d in range(n, 0, -1) if n % d == 0]


class _Geometry:
    """Canonical padded layout shared by the pool and all conv layers.

    Rows [head, head+H) x cols [1, W+1) hold the image; everything else is zero.
    head >= 2 and head % tr == 0 guarantee that every row band that runs the conv
    matmul only reads flattened indices inside [0, Pp).
    """

    def __init__(self, H, W, tr):
        self.H, self.W, self.tr = H, W, tr
        self.W2 = _round_up(W + 2, 8)          # padded row length (multiple of 8)
        self.head = max(tr, 2)                 # top/bottom halo rows
        self.Hp = H + 2 * self.head            # total padded rows
        self.Pp = self.Hp * self.W2            # flattened padded positions
        self.Bp = tr * self.W2                 # flattened positions per band
        self.n_bands = self.Hp // tr
        self.first_band = self.head // tr      # first band holding valid rows
        self.n_valid_bands = H // tr


def _conv_vmem_estimate(geom, cin, tco, itemsize):
    """Conservative per-step VMEM estimate for the conv kernel (bytes)."""
    x_block = 2 * geom.Pp * cin * itemsize                # resident padded image (x2 buffers)
    w_block = 2 * 9 * cin * tco * itemsize                # tap-major weights
    o_block = 2 * geom.Bp * tco * itemsize                # banded output
    acc = 2 * geom.Bp * max(tco, 128) * 4                 # f32 accumulator + temporaries
    taps = geom.Bp * max(cin, 128) * itemsize             # one shifted slab at a time
    return x_block + w_block + o_block + acc + taps


def _choose_cout_tile(cout, cap=512):
    """Largest 128-multiple divisor of Cout (<= cap); otherwise the full Cout."""
    if cout % 128 == 0 and cout > cap:
        t = (cap // 128) * 128
        while t >= 128:
            if cout % t == 0:
                return t
            t -= 128
    return cout


def _choose_geometry(H, W, cin_max, tco, itemsize, budget, max_band_rows=32):
    """Largest row band (divisor of H) whose conv working set fits the budget."""
    candidates = [d for d in _divisors_desc(H) if d <= max_band_rows]
    for tr in candidates:
        geom = _Geometry(H, W, tr)
        if _conv_vmem_estimate(geom, cin_max, tco, itemsize) <= budget:
            return geom
    # Nothing fits (the resident padded image dominates): take the largest band
    # anyway; vmem_limit_bytes is derived from the actual estimate below.
    return _Geometry(H, W, candidates[0])


# ----------------------------------------------------------------------------
# MaxPool2d(2) that writes directly into the canonical padded layout
# ----------------------------------------------------------------------------
def maxpool2x2_into_padded(x_nhwc, geom, vmem_limit):
    N, H0, W0, C = x_nhwc.shape
    H, W, W2, tr = geom.H, geom.W, geom.W2, geom.tr
    assert H0 == 2 * H and W0 == 2 * W
    Bp, Pp = geom.Bp, geom.Pp
    first_b, n_valid = geom.first_band, geom.n_valid_bands

    # Free reshape: the two pooled columns land in the lane axis ([:C] vs [C:]),
    # the two pooled rows in a small outer dim -> the kernel is pure element max.
    xr = x_nhwc.reshape(N, H, 2, W, 2 * C)

    def kernel(x_ref, o_ref):
        b = pl.program_id(1)
        o_ref[...] = jnp.zeros_like(o_ref)               # halo rows / pad columns

        @pl.when((b >= first_b) & (b < first_b + n_valid))
        def _():
            x = x_ref[0]                                  # (tr, 2, W, 2C)
            m = jnp.maximum(x[..., :C], x[..., C:])       # pool along W (lane halves)
            pooled = jnp.maximum(m[:, 0], m[:, 1])        # pool along H -> (tr, W, C)
            for i in range(tr):                           # place at columns [1, W+1)
                o_ref[0, pl.ds(i * W2 + 1, W), :] = pooled[i]

    return pl.pallas_call(
        kernel,
        out_shape=jax.ShapeDtypeStruct((N, Pp, C), x_nhwc.dtype),
        grid_spec=pltpu.PrefetchScalarGridSpec(
            num_scalar_prefetch=0,
            grid=(N, geom.n_bands),
            in_specs=[pl.BlockSpec(
                (1, tr, 2, W, 2 * C),
                # halo bands ignore their input; clip keeps the DMA index in range
                lambda n, b: (n, jnp.clip(b - first_b, 0, max(n_valid - 1, 0)),
                              0, 0, 0))],
            out_specs=pl.BlockSpec((1, Bp, C), lambda n, b: (n, b, 0)),
        ),
        compiler_params=pltpu.CompilerParams(
            dimension_semantics=("parallel", "parallel"),
            vmem_limit_bytes=vmem_limit),
    )(xr)


# ----------------------------------------------------------------------------
# Fused Conv2d(3x3, pad=1) + folded BatchNorm + ReLU on the canonical layout
# ----------------------------------------------------------------------------
def conv3x3_bn_relu_padded(x_pad, w9, bias, geom, tco, vmem_limit):
    """x_pad: (N, Pp, Cin) canonical padded activation (zero halo).
    w9  : (9, Cin, Cout) tap-major weights, BN scale already folded in.
    bias: (1, Cout) f32, (conv_bias - running_mean) * scale + beta.
    Returns (N, Pp, Cout) in the same canonical padded layout.
    """
    N, Pp, Cin = x_pad.shape
    Cout = w9.shape[-1]
    W, W2, Bp = geom.W, geom.W2, geom.Bp
    first_b, n_valid = geom.first_band, geom.n_valid_bands
    n_ct = Cout // tco
    # TODO(synk): feature maps whose whole padded image exceeds the VMEM budget
    # would need halo row-band input DMA (pl.ANY + pltpu.make_async_copy);
    # MCFNet-scale maps stay resident comfortably.

    def kernel(x_ref, w_ref, b_ref, o_ref):
        b = pl.program_id(2)
        valid = (b >= first_b) & (b < first_b + n_valid)

        @pl.when(valid)
        def _():
            p0 = b * Bp

            def tap(t):
                dy, dx = divmod(t, 3)
                start = p0 + (dy - 1) * W2 + (dx - 1)
                return x_ref[0, pl.ds(start, Bp), :]       # (Bp, Cin)

            # First tap initializes the accumulator (no zero-fill + add pass).
            acc = jnp.dot(tap(0), w_ref[0], preferred_element_type=jnp.float32)
            for t in range(1, 9):
                acc = acc + jnp.dot(tap(t), w_ref[t],
                                    preferred_element_type=jnp.float32)
            y = jnp.maximum(acc + b_ref[...], 0.0)         # folded BN bias + ReLU
            col = jax.lax.broadcasted_iota(jnp.int32, (Bp, 1), 0) % W2
            keep = (col >= 1) & (col <= W)                 # zero the pad columns
            o_ref[0] = jnp.where(keep, y, 0.0).astype(o_ref.dtype)

        @pl.when(jnp.logical_not(valid))
        def _():
            o_ref[...] = jnp.zeros_like(o_ref)             # halo row bands

    return pl.pallas_call(
        kernel,
        out_shape=jax.ShapeDtypeStruct((N, Pp, Cout), x_pad.dtype),
        grid_spec=pltpu.PrefetchScalarGridSpec(
            num_scalar_prefetch=0,
            grid=(N, n_ct, geom.n_bands),
            in_specs=[
                # Whole padded image: index map ignores the inner axes, so it is
                # DMA'd once per image and stays resident across (cout, band).
                pl.BlockSpec((1, Pp, Cin), lambda n, c, b: (n, 0, 0)),
                pl.BlockSpec((9, Cin, tco), lambda n, c, b: (0, 0, c)),
                pl.BlockSpec((1, tco), lambda n, c, b: (0, c)),
            ],
            out_specs=pl.BlockSpec((1, Bp, tco), lambda n, c, b: (n, b, c)),
        ),
        compiler_params=pltpu.CompilerParams(
            dimension_semantics=("parallel", "parallel", "parallel"),
            vmem_limit_bytes=vmem_limit),
    )(x_pad, w9, bias)


# ----------------------------------------------------------------------------
# Parameter folding + full DownBlock2 forward
# ----------------------------------------------------------------------------
def fold_conv_bn(w, b, gamma, beta, running_mean, running_var, eps=1e-5):
    """PyTorch Conv2d(3x3) + BatchNorm2d(eval) -> fused kernel params.

    The BN scale is folded into the conv weights so the kernel epilogue is just
    max(acc + bias, 0):  BN(conv(x, w) + b) == conv(x, w*s) + ((b - mean)*s + beta).
    """
    cout, cin, kh, kw = w.shape
    assert (kh, kw) == (3, 3)
    scale = gamma / jnp.sqrt(running_var + eps)                      # (Cout,)
    w9 = jnp.transpose(w, (2, 3, 1, 0)).reshape(9, cin, cout)        # tap-major
    w9 = (w9 * scale[None, None, :]).astype(jnp.float32)
    bias = ((b - running_mean) * scale + beta).reshape(1, cout).astype(jnp.float32)
    return {"w9": w9, "bias": bias}


# TODO(synk): BatchNorm is applied in inference mode (folded running stats);
# training-mode batch statistics are not computed inside the kernels.
def down_block2(x_nchw, layer_params, compute_dtype=None):
    """DownBlock2.forward: MaxPool2d(2) then nb_Conv x (Conv3x3 + BN + ReLU)."""
    N, Cin, H0, W0 = x_nchw.shape
    assert H0 % 2 == 0 and W0 % 2 == 0, "MaxPool2d(2) needs even spatial dims"
    H, W = H0 // 2, W0 // 2
    if compute_dtype is None:
        compute_dtype = x_nchw.dtype
    itemsize = jnp.dtype(compute_dtype).itemsize

    cins = [p["w9"].shape[1] for p in layer_params]
    couts = [p["w9"].shape[-1] for p in layer_params]
    cmax = max(cins + couts)
    tco_max = max(_choose_cout_tile(c) for c in couts)

    # Generation-aware VMEM budget: sized for the smallest per-core VMEM (v7x,
    # 64 MiB) by default; larger if the runtime reports more (v5e/v6e: 128 MiB).
    phys = _physical_vmem_bytes()
    budget = int(phys * 0.55)
    geom = _choose_geometry(H, W, cmax, tco_max, itemsize, budget)
    vmem_limit = int(min(phys * 0.9,
                         max(32 * _MIB,
                             1.4 * _conv_vmem_estimate(geom, cmax, tco_max, itemsize))))

    h = jnp.transpose(x_nchw, (0, 2, 3, 1)).astype(compute_dtype)    # NCHW -> NHWC
    h = maxpool2x2_into_padded(h, geom, vmem_limit)                  # canonical padded layout
    for p in layer_params:
        w9 = p["w9"].astype(compute_dtype)
        h = conv3x3_bn_relu_padded(h, w9, p["bias"], geom,
                                   _choose_cout_tile(w9.shape[-1]), vmem_limit)

    # Strip the padding once, after the last conv, and go back to NCHW.
    out = h.reshape(N, geom.Hp, geom.W2, couts[-1])
    out = out[:, geom.head:geom.head + H, 1:W + 1, :]
    return jnp.transpose(out, (0, 3, 1, 2))


# ----------------------------------------------------------------------------
# Pure-JAX reference (mirrors PyTorch eval-mode forward)
# ----------------------------------------------------------------------------
def _reference_down_block2(x, raw_params, eps=1e-5):
    N, C, H, W = x.shape
    h = x.reshape(N, C, H // 2, 2, W // 2, 2).max(axis=(3, 5))       # MaxPool2d(2)
    for (w, b, gamma, beta, mean, var) in raw_params:
        y = jax.lax.conv_general_dilated(
            h, w, window_strides=(1, 1), padding=((1, 1), (1, 1)),
            dimension_numbers=("NCHW", "OIHW", "NCHW"),
            precision=jax.lax.Precision.HIGHEST,
            preferred_element_type=jnp.float32)
        y = y + b[None, :, None, None]
        y = (y - mean[None, :, None, None]) / jnp.sqrt(var[None, :, None, None] + eps)
        y = gamma[None, :, None, None] * y + beta[None, :, None, None]
        h = jnp.maximum(y, 0.0).astype(x.dtype)
    return h


if __name__ == "__main__":
    key = jax.random.PRNGKey(0)
    ks = jax.random.split(key, 4)

    N, Cin, Cout, H0, W0 = 2, 4, 8, 16, 16
    nb_conv = 2

    def make_layer(kws, cin, cout):
        kw_, kb, kg, kbe, km, kv = kws
        w = 0.2 * jax.random.normal(kw_, (cout, cin, 3, 3), jnp.float32)
        b = 0.1 * jax.random.normal(kb, (cout,), jnp.float32)
        gamma = 1.0 + 0.1 * jax.random.normal(kg, (cout,), jnp.float32)
        beta = 0.1 * jax.random.normal(kbe, (cout,), jnp.float32)
        mean = 0.1 * jax.random.normal(km, (cout,), jnp.float32)
        var = 1.0 + 0.1 * jnp.abs(jax.random.normal(kv, (cout,), jnp.float32))
        return (w, b, gamma, beta, mean, var)

    raw_params = []
    cin = Cin
    for i in range(nb_conv):
        raw_params.append(make_layer(jax.random.split(ks[i], 6), cin, Cout))
        cin = Cout

    x = jax.random.normal(ks[2], (N, Cin, H0, W0), jnp.float32)
    layer_params = [fold_conv_bn(*p) for p in raw_params]

    fwd = jax.jit(down_block2, static_argnames=("compute_dtype",))

    # f32 run, checked against a pure-JAX reference of the PyTorch forward.
    out = jax.block_until_ready(fwd(x, layer_params))
    ref = _reference_down_block2(x, raw_params)
    assert out.shape == (N, Cout, H0 // 2, W0 // 2), out.shape
    # Tolerance covers MXU f32 pass-count differences vs. the HIGHEST-precision
    # XLA reference convolution.
    assert jnp.allclose(out, ref, atol=1e-2, rtol=1e-2), (
        float(jnp.max(jnp.abs(out - ref))))

    # bf16 run (MXU-native operands); loose tolerance for the reduced precision.
    out_bf16 = jax.block_until_ready(fwd(x, layer_params, compute_dtype=jnp.bfloat16))
    assert jnp.allclose(out_bf16.astype(jnp.float32), ref, atol=1e-1, rtol=1e-1), (
        float(jnp.max(jnp.abs(out_bf16.astype(jnp.float32) - ref))))

    print("KERNEL_OK")
</pallas_src>

<mosaic_0001>
module attributes {stable_mosaic.version = 11 : i64} {
  func.func @kernel(%arg0: i32, %arg1: i32, %arg2: memref<1x8x2x8x8xf32, #tpu.memory_space<vmem>>, %arg3: memref<1x128x4xf32, #tpu.memory_space<vmem>>) attributes {dimension_semantics = [#tpu.dimension_semantics<parallel>, #tpu.dimension_semantics<parallel>], iteration_bounds = array<i64: 2, 3>, scalar_prefetch = 0 : i64, scratch_operands = 0 : i64, tpu.core_type = #tpu.core_type<tc>, window_params = [{transform_indices = @transform_0, window_bounds = array<i64: 1, 8, 2, 8, 8>}, {transform_indices = @transform_1, window_bounds = array<i64: 1, 128, 4>}]} {
    %cst = arith.constant 0.000000e+00 : f32
    %0 = vector.broadcast %cst : f32 to vector<1x128x4xf32>
    %c0 = arith.constant 0 : index
    %c0_0 = arith.constant 0 : index
    %c0_1 = arith.constant 0 : index
    %1 = vector.load %arg3[%c0, %c0_0, %c0_1] : memref<1x128x4xf32, #tpu.memory_space<vmem>>, vector<1x128x4xf32>
    tpu.vector_store %arg3[%c0, %c0_0, %c0_1], %0 {strides = array<i32>} : memref<1x128x4xf32, #tpu.memory_space<vmem>>, vector<1x128x4xf32>,
    %c1_i32 = arith.constant 1 : i32
    %2 = arith.cmpi sge, %arg1, %c1_i32 : i32
    %c2_i32 = arith.constant 2 : i32
    %3 = arith.cmpi slt, %arg1, %c2_i32 : i32
    %4 = arith.andi %2, %3 : i1
    %5 = arith.extui %4 : i1 to i32
    %c0_i32 = arith.constant 0 : i32
    %6 = arith.cmpi ne, %5, %c0_i32 : i32
    scf.if %6 {
      %c0_2 = arith.constant 0 : index
      %c0_3 = arith.constant 0 : index
      %c0_4 = arith.constant 0 : index
      %c0_5 = arith.constant 0 : index
      %c0_6 = arith.constant 0 : index
      %7 = vector.load %arg2[%c0_2, %c0_3, %c0_4, %c0_5, %c0_6] : memref<1x8x2x8x8xf32, #tpu.memory_space<vmem>>, vector<1x8x2x8x8xf32>
      %8 = vector.shape_cast %7 : vector<1x8x2x8x8xf32> to vector<8x2x8x8xf32>
      %9 = vector.extract_strided_slice %8 {offsets = [0, 0, 0, 0], sizes = [8, 2, 8, 4], strides = [1, 1, 1, 1]} : vector<8x2x8x8xf32> to vector<8x2x8x4xf32>
      %10 = vector.extract_strided_slice %8 {offsets = [0, 0, 0, 4], sizes = [8, 2, 8, 4], strides = [1, 1, 1, 1]} : vector<8x2x8x8xf32> to vector<8x2x8x4xf32>
      %11 = arith.maximumf %9, %10 : vector<8x2x8x4xf32>
      %12 = vector.extract_strided_slice %11 {offsets = [0, 0, 0, 0], sizes = [8, 1, 8, 4], strides = [1, 1, 1, 1]} : vector<8x2x8x4xf32> to vector<8x1x8x4xf32>
      %13 = vector.shape_cast %12 : vector<8x1x8x4xf32> to vector<8x8x4xf32>
      %14 = vector.extract_strided_slice %11 {offsets = [0, 1, 0, 0], sizes = [8, 1, 8, 4], strides = [1, 1, 1, 1]} : vector<8x2x8x4xf32> to vector<8x1x8x4xf32>
      %15 = vector.shape_cast %14 : vector<8x1x8x4xf32> to vector<8x8x4xf32>
      %16 = arith.maximumf %13, %15 : vector<8x8x4xf32>
      %17 = vector.extract_strided_slice %16 {offsets = [0, 0, 0], sizes = [1, 8, 4], strides = [1, 1, 1]} : vector<8x8x4xf32> to vector<1x8x4xf32>
      %18 = vector.shape_cast %17 : vector<1x8x4xf32> to vector<8x4xf32>
      %c0_7 = arith.constant 0 : index
      %c1 = arith.constant 1 : index
      %c0_8 = arith.constant 0 : index
      %19 = vector.load %arg3[%c0_7, %c1, %c0_8] : memref<1x128x4xf32, #tpu.memory_space<vmem>>, vector<1x8x4xf32>
      %20 = vector.shape_cast %19 : vector<1x8x4xf32> to vector<8x4xf32>
      %21 = vector.shape_cast %18 : vector<8x4xf32> to vector<1x8x4xf32>
      tpu.vector_store %arg3[%c0_7, %c1, %c0_8], %21 {strides = array<i32>} : memref<1x128x4xf32, #tpu.memory_space<vmem>>, vector<1x8x4xf32>,
      %22 = vector.extract_strided_slice %16 {offsets = [1, 0, 0], sizes = [1, 8, 4], strides = [1, 1, 1]} : vector<8x8x4xf32> to vector<1x8x4xf32>
      %23 = vector.shape_cast %22 : vector<1x8x4xf32> to vector<8x4xf32>
      %c0_9 = arith.constant 0 : index
      %c17 = arith.constant 17 : index
      %c0_10 = arith.constant 0 : index
      %24 = vector.load %arg3[%c0_9, %c17, %c0_10] : memref<1x128x4xf32, #tpu.memory_space<vmem>>, vector<1x8x4xf32>
      %25 = vector.shape_cast %24 : vector<1x8x4xf32> to vector<8x4xf32>
      %26 = vector.shape_cast %23 : vector<8x4xf32> to vector<1x8x4xf32>
      tpu.vector_store %arg3[%c0_9, %c17, %c0_10], %26 {strides = array<i32>} : memref<1x128x4xf32, #tpu.memory_space<vmem>>, vector<1x8x4xf32>,
      %27 = vector.extract_strided_slice %16 {offsets = [2, 0, 0], sizes = [1, 8, 4], strides = [1, 1, 1]} : vector<8x8x4xf32> to vector<1x8x4xf32>
      %28 = vector.shape_cast %27 : vector<1x8x4xf32> to vector<8x4xf32>
      %c0_11 = arith.constant 0 : index
      %c33 = arith.constant 33 : index
      %c0_12 = arith.constant 0 : index
      %29 = vector.load %arg3[%c0_11, %c33, %c0_12] : memref<1x128x4xf32, #tpu.memory_space<vmem>>, vector<1x8x4xf32>
      %30 = vector.shape_cast %29 : vector<1x8x4xf32> to vector<8x4xf32>
      %31 = vector.shape_cast %28 : vector<8x4xf32> to vector<1x8x4xf32>
      tpu.vector_store %arg3[%c0_11, %c33, %c0_12], %31 {strides = array<i32>} : memref<1x128x4xf32, #tpu.memory_space<vmem>>, vector<1x8x4xf32>,
      %32 = vector.extract_strided_slice %16 {offsets = [3, 0, 0], sizes = [1, 8, 4], strides = [1, 1, 1]} : vector<8x8x4xf32> to vector<1x8x4xf32>
      %33 = vector.shape_cast %32 : vector<1x8x4xf32> to vector<8x4xf32>
      %c0_13 = arith.constant 0 : index
      %c49 = arith.constant 49 : index
      %c0_14 = arith.constant 0 : index
      %34 = vector.load %arg3[%c0_13, %c49, %c0_14] : memref<1x128x4xf32, #tpu.memory_space<vmem>>, vector<1x8x4xf32>
      %35 = vector.shape_cast %34 : vector<1x8x4xf32> to vector<8x4xf32>
      %36 = vector.shape_cast %33 : vector<8x4xf32> to vector<1x8x4xf32>
      tpu.vector_store %arg3[%c0_13, %c49, %c0_14], %36 {strides = array<i32>} : memref<1x128x4xf32, #tpu.memory_space<vmem>>, vector<1x8x4xf32>,
      %37 = vector.extract_strided_slice %16 {offsets = [4, 0, 0], sizes = [1, 8, 4], strides = [1, 1, 1]} : vector<8x8x4xf32> to vector<1x8x4xf32>
      %38 = vector.shape_cast %37 : vector<1x8x4xf32> to vector<8x4xf32>
      %c0_15 = arith.constant 0 : index
      %c65 = arith.constant 65 : index
      %c0_16 = arith.constant 0 : index
      %39 = vector.load %arg3[%c0_15, %c65, %c0_16] : memref<1x128x4xf32, #tpu.memory_space<vmem>>, vector<1x8x4xf32>
      %40 = vector.shape_cast %39 : vector<1x8x4xf32> to vector<8x4xf32>
      %41 = vector.shape_cast %38 : vector<8x4xf32> to vector<1x8x4xf32>
      tpu.vector_store %arg3[%c0_15, %c65, %c0_16], %41 {strides = array<i32>} : memref<1x128x4xf32, #tpu.memory_space<vmem>>, vector<1x8x4xf32>,
      %42 = vector.extract_strided_slice %16 {offsets = [5, 0, 0], sizes = [1, 8, 4], strides = [1, 1, 1]} : vector<8x8x4xf32> to vector<1x8x4xf32>
      %43 = vector.shape_cast %42 : vector<1x8x4xf32> to vector<8x4xf32>
      %c0_17 = arith.constant 0 : index
      %c81 = arith.constant 81 : index
      %c0_18 = arith.constant 0 : index
      %44 = vector.load %arg3[%c0_17, %c81, %c0_18] : memref<1x128x4xf32, #tpu.memory_space<vmem>>, vector<1x8x4xf32>
      %45 = vector.shape_cast %44 : vector<1x8x4xf32> to vector<8x4xf32>
      %46 = vector.shape_cast %43 : vector<8x4xf32> to vector<1x8x4xf32>
      tpu.vector_store %arg3[%c0_17, %c81, %c0_18], %46 {strides = array<i32>} : memref<1x128x4xf32, #tpu.memory_space<vmem>>, vector<1x8x4xf32>,
      %47 = vector.extract_strided_slice %16 {offsets = [6, 0, 0], sizes = [1, 8, 4], strides = [1, 1, 1]} : vector<8x8x4xf32> to vector<1x8x4xf32>
      %48 = vector.shape_cast %47 : vector<1x8x4xf32> to vector<8x4xf32>
      %c0_19 = arith.constant 0 : index
      %c97 = arith.constant 97 : index
      %c0_20 = arith.constant 0 : index
      %49 = vector.load %arg3[%c0_19, %c97, %c0_20] : memref<1x128x4xf32, #tpu.memory_space<vmem>>, vector<1x8x4xf32>
      %50 = vector.shape_cast %49 : vector<1x8x4xf32> to vector<8x4xf32>
      %51 = vector.shape_cast %48 : vector<8x4xf32> to vector<1x8x4xf32>
      tpu.vector_store %arg3[%c0_19, %c97, %c0_20], %51 {strides = array<i32>} : memref<1x128x4xf32, #tpu.memory_space<vmem>>, vector<1x8x4xf32>,
      %52 = vector.extract_strided_slice %16 {offsets = [7, 0, 0], sizes = [1, 8, 4], strides = [1, 1, 1]} : vector<8x8x4xf32> to vector<1x8x4xf32>
      %53 = vector.shape_cast %52 : vector<1x8x4xf32> to vector<8x4xf32>
      %c0_21 = arith.constant 0 : index
      %c113 = arith.constant 113 : index
      %c0_22 = arith.constant 0 : index
      %54 = vector.load %arg3[%c0_21, %c113, %c0_22] : memref<1x128x4xf32, #tpu.memory_space<vmem>>, vector<1x8x4xf32>
      %55 = vector.shape_cast %54 : vector<1x8x4xf32> to vector<8x4xf32>
      %56 = vector.shape_cast %53 : vector<8x4xf32> to vector<1x8x4xf32>
      tpu.vector_store %arg3[%c0_21, %c113, %c0_22], %56 {strides = array<i32>} : memref<1x128x4xf32, #tpu.memory_space<vmem>>, vector<1x8x4xf32>,
    } else {
    }
    return
  }
  func.func @transform_0(%arg0: i32, %arg1: i32) -> (i32, i32, i32, i32, i32) {
    %c1_i32 = arith.constant 1 : i32
    %0 = arith.subi %arg1, %c1_i32 : i32
    %c0_i32 = arith.constant 0 : i32
    %c0_i32_0 = arith.constant 0 : i32
    %1 = arith.maxsi %c0_i32, %0 : i32
    %2 = arith.minsi %c0_i32_0, %1 : i32
    %c0_i32_1 = arith.constant 0 : i32
    %c0_i32_2 = arith.constant 0 : i32
    %c0_i32_3 = arith.constant 0 : i32
    %c0_i32_4 = arith.constant 0 : i32
    return %arg0, %2, %c0_i32_1, %c0_i32_2, %c0_i32_3 : i32, i32, i32, i32, i32
  }
  func.func @transform_1(%arg0: i32, %arg1: i32) -> (i32, i32, i32) {
    %c0_i32 = arith.constant 0 : i32
    %c0_i32_0 = arith.constant 0 : i32
    return %arg0, %arg1, %c0_i32 : i32, i32, i32
  }
}

module attributes {stable_mosaic.version = 11 : i64} {
  func.func @kernel(%arg0: i32, %arg1: i32, %arg2: i32, %arg3: memref<1x384x4xf32, #tpu.memory_space<vmem>>, %arg4: memref<9x4x8xf32, #tpu.memory_space<vmem>>, %arg5: memref<1x8xf32, #tpu.memory_space<vmem>>, %arg6: memref<1x128x8xf32, #tpu.memory_space<vmem>>) attributes {dimension_semantics = [#tpu.dimension_semantics<parallel>, #tpu.dimension_semantics<parallel>, #tpu.dimension_semantics<parallel>], iteration_bounds = array<i64: 2, 1, 3>, scalar_prefetch = 0 : i64, scratch_operands = 0 : i64, tpu.core_type = #tpu.core_type<tc>, window_params = [{transform_indices = @transform_0, window_bounds = array<i64: 1, 384, 4>}, {transform_indices = @transform_1, window_bounds = array<i64: 9, 4, 8>}, {transform_indices = @transform_2, window_bounds = array<i64: 1, 8>}, {transform_indices = @transform_3, window_bounds = array<i64: 1, 128, 8>}]} {
    %c1_i32 = arith.constant 1 : i32
    %0 = arith.cmpi sge, %arg2, %c1_i32 : i32
    %c2_i32 = arith.constant 2 : i32
    %1 = arith.cmpi slt, %arg2, %c2_i32 : i32
    %2 = arith.andi %0, %1 : i1
    %3 = arith.extui %2 : i1 to i32
    %c0_i32 = arith.constant 0 : i32
    %4 = arith.cmpi ne, %3, %c0_i32 : i32
    scf.if %4 {
      %c128_i32 = arith.constant 128 : i32
      %8 = arith.muli %arg2, %c128_i32 : i32
      %c-16_i32 = arith.constant -16 : i32
      %9 = arith.addi %8, %c-16_i32 : i32
      %c-1_i32 = arith.constant -1 : i32
      %10 = arith.addi %9, %c-1_i32 : i32
      %c0 = arith.constant 0 : index
      %11 = arith.index_cast %10 : i32 to index
      %c0_1 = arith.constant 0 : index
      %12 = vector.load %arg3[%c0, %11, %c0_1] : memref<1x384x4xf32, #tpu.memory_space<vmem>>, vector<1x128x4xf32>
      %13 = vector.shape_cast %12 : vector<1x128x4xf32> to vector<128x4xf32>
      %c0_2 = arith.constant 0 : index
      %c0_3 = arith.constant 0 : index
      %c0_4 = arith.constant 0 : index
      %14 = vector.load %arg4[%c0_2, %c0_3, %c0_4] : memref<9x4x8xf32, #tpu.memory_space<vmem>>, vector<1x4x8xf32>
      %15 = vector.shape_cast %14 : vector<1x4x8xf32> to vector<4x8xf32>
      %cst = arith.constant dense<0.000000e+00> : vector<128x8xf32>
      %16 = tpu.matmul %13, %15, %cst {dimension_numbers = #tpu.dot_dimension_numbers<[1], [0], [0], [1], [0, 0, 1, 1], [], []>} : vector<128x4xf32>, vector<4x8xf32>, vector<128x8xf32> -> vector<128x8xf32>
      %c-16_i32_5 = arith.constant -16 : i32
      %17 = arith.addi %8, %c-16_i32_5 : i32
      %c0_i32_6 = arith.constant 0 : i32
      %18 = arith.addi %17, %c0_i32_6 : i32
      %c0_7 = arith.constant 0 : index
      %19 = arith.index_cast %18 : i32 to index
      %c0_8 = arith.constant 0 : index
      %20 = vector.load %arg3[%c0_7, %19, %c0_8] : memref<1x384x4xf32, #tpu.memory_space<vmem>>, vector<1x128x4xf32>
      %21 = vector.shape_cast %20 : vector<1x128x4xf32> to vector<128x4xf32>
      %c1 = arith.constant 1 : index
      %c0_9 = arith.constant 0 : index
      %c0_10 = arith.constant 0 : index
      %22 = vector.load %arg4[%c1, %c0_9, %c0_10] : memref<9x4x8xf32, #tpu.memory_space<vmem>>, vector<1x4x8xf32>
      %23 = vector.shape_cast %22 : vector<1x4x8xf32> to vector<4x8xf32>
      %cst_11 = arith.constant dense<0.000000e+00> : vector<128x8xf32>
      %24 = tpu.matmul %21, %23, %cst_11 {dimension_numbers = #tpu.dot_dimension_numbers<[1], [0], [0], [1], [0, 0, 1, 1], [], []>} : vector<128x4xf32>, vector<4x8xf32>, vector<128x8xf32> -> vector<128x8xf32>
      %25 = arith.addf %16, %24 : vector<128x8xf32>
      %c-16_i32_12 = arith.constant -16 : i32
      %26 = arith.addi %8, %c-16_i32_12 : i32
      %c1_i32_13 = arith.constant 1 : i32
      %27 = arith.addi %26, %c1_i32_13 : i32
      %c0_14 = arith.constant 0 : index
      %28 = arith.index_cast %27 : i32 to index
      %c0_15 = arith.constant 0 : index
      %29 = vector.load %arg3[%c0_14, %28, %c0_15] : memref<1x384x4xf32, #tpu.memory_space<vmem>>, vector<1x128x4xf32>
      %30 = vector.shape_cast %29 : vector<1x128x4xf32> to vector<128x4xf32>
      %c2 = arith.constant 2 : index
      %c0_16 = arith.constant 0 : index
      %c0_17 = arith.constant 0 : index
      %31 = vector.load %arg4[%c2, %c0_16, %c0_17] : memref<9x4x8xf32, #tpu.memory_space<vmem>>, vector<1x4x8xf32>
      %32 = vector.shape_cast %31 : vector<1x4x8xf32> to vector<4x8xf32>
      %cst_18 = arith.constant dense<0.000000e+00> : vector<128x8xf32>
      %33 = tpu.matmul %30, %32, %cst_18 {dimension_numbers = #tpu.dot_dimension_numbers<[1], [0], [0], [1], [0, 0, 1, 1], [], []>} : vector<128x4xf32>, vector<4x8xf32>, vector<128x8xf32> -> vector<128x8xf32>
      %34 = arith.addf %25, %33 : vector<128x8xf32>
      %c0_i32_19 = arith.constant 0 : i32
      %35 = arith.addi %8, %c0_i32_19 : i32
      %c-1_i32_20 = arith.constant -1 : i32
      %36 = arith.addi %35, %c-1_i32_20 : i32
      %c0_21 = arith.constant 0 : index
      %37 = arith.index_cast %36 : i32 to index
      %c0_22 = arith.constant 0 : index
      %38 = vector.load %arg3[%c0_21, %37, %c0_22] : memref<1x384x4xf32, #tpu.memory_space<vmem>>, vector<1x128x4xf32>
      %39 = vector.shape_cast %38 : vector<1x128x4xf32> to vector<128x4xf32>
      %c3 = arith.constant 3 : index
      %c0_23 = arith.constant 0 : index
      %c0_24 = arith.constant 0 : index
      %40 = vector.load %arg4[%c3, %c0_23, %c0_24] : memref<9x4x8xf32, #tpu.memory_space<vmem>>, vector<1x4x8xf32>
      %41 = vector.shape_cast %40 : vector<1x4x8xf32> to vector<4x8xf32>
      %cst_25 = arith.constant dense<0.000000e+00> : vector<128x8xf32>
      %42 = tpu.matmul %39, %41, %cst_25 {dimension_numbers = #tpu.dot_dimension_numbers<[1], [0], [0], [1], [0, 0, 1, 1], [], []>} : vector<128x4xf32>, vector<4x8xf32>, vector<128x8xf32> -> vector<128x8xf32>
      %43 = arith.addf %34, %42 : vector<128x8xf32>
      %c0_i32_26 = arith.constant 0 : i32
      %44 = arith.addi %8, %c0_i32_26 : i32
      %c0_i32_27 = arith.constant 0 : i32
      %45 = arith.addi %44, %c0_i32_27 : i32
      %c0_28 = arith.constant 0 : index
      %46 = arith.index_cast %45 : i32 to index
      %c0_29 = arith.constant 0 : index
      %47 = vector.load %arg3[%c0_28, %46, %c0_29] : memref<1x384x4xf32, #tpu.memory_space<vmem>>, vector<1x128x4xf32>
      %48 = vector.shape_cast %47 : vector<1x128x4xf32> to vector<128x4xf32>
      %c4 = arith.constant 4 : index
      %c0_30 = arith.constant 0 : index
      %c0_31 = arith.constant 0 : index
      %49 = vector.load %arg4[%c4, %c0_30, %c0_31] : memref<9x4x8xf32, #tpu.memory_space<vmem>>, vector<1x4x8xf32>
      %50 = vector.shape_cast %49 : vector<1x4x8xf32> to vector<4x8xf32>
      %cst_32 = arith.constant dense<0.000000e+00> : vector<128x8xf32>
      %51 = tpu.matmul %48, %50, %cst_32 {dimension_numbers = #tpu.dot_dimension_numbers<[1], [0], [0], [1], [0, 0, 1, 1], [], []>} : vector<128x4xf32>, vector<4x8xf32>, vector<128x8xf32> -> vector<128x8xf32>
      %52 = arith.addf %43, %51 : vector<128x8xf32>
      %c0_i32_33 = arith.constant 0 : i32
      %53 = arith.addi %8, %c0_i32_33 : i32
      %c1_i32_34 = arith.constant 1 : i32
      %54 = arith.addi %53, %c1_i32_34 : i32
      %c0_35 = arith.constant 0 : index
      %55 = arith.index_cast %54 : i32 to index
      %c0_36 = arith.constant 0 : index
      %56 = vector.load %arg3[%c0_35, %55, %c0_36] : memref<1x384x4xf32, #tpu.memory_space<vmem>>, vector<1x128x4xf32>
      %57 = vector.shape_cast %56 : vector<1x128x4xf32> to vector<128x4xf32>
      %c5 = arith.constant 5 : index
      %c0_37 = arith.constant 0 : index
      %c0_38 = arith.constant 0 : index
      %58 = vector.load %arg4[%c5, %c0_37, %c0_38] : memref<9x4x8xf32, #tpu.memory_space<vmem>>, vector<1x4x8xf32>
      %59 = vector.shape_cast %58 : vector<1x4x8xf32> to vector<4x8xf32>
      %cst_39 = arith.constant dense<0.000000e+00> : vector<128x8xf32>
      %60 = tpu.matmul %57, %59, %cst_39 {dimension_numbers = #tpu.dot_dimension_numbers<[1], [0], [0], [1], [0, 0, 1, 1], [], []>} : vector<128x4xf32>, vector<4x8xf32>, vector<128x8xf32> -> vector<128x8xf32>
      %61 = arith.addf %52, %60 : vector<128x8xf32>
      %c16_i32 = arith.constant 16 : i32
      %62 = arith.addi %8, %c16_i32 : i32
      %c-1_i32_40 = arith.constant -1 : i32
      %63 = arith.addi %62, %c-1_i32_40 : i32
      %c0_41 = arith.constant 0 : index
      %64 = arith.index_cast %63 : i32 to index
      %c0_42 = arith.constant 0 : index
      %65 = vector.load %arg3[%c0_41, %64, %c0_42] : memref<1x384x4xf32, #tpu.memory_space<vmem>>, vector<1x128x4xf32>
      %66 = vector.shape_cast %65 : vector<1x128x4xf32> to vector<128x4xf32>
      %c6 = arith.constant 6 : index
      %c0_43 = arith.constant 0 : index
      %c0_44 = arith.constant 0 : index
      %67 = vector.load %arg4[%c6, %c0_43, %c0_44] : memref<9x4x8xf32, #tpu.memory_space<vmem>>, vector<1x4x8xf32>
      %68 = vector.shape_cast %67 : vector<1x4x8xf32> to vector<4x8xf32>
      %cst_45 = arith.constant dense<0.000000e+00> : vector<128x8xf32>
      %69 = tpu.matmul %66, %68, %cst_45 {dimension_numbers = #tpu.dot_dimension_numbers<[1], [0], [0], [1], [0, 0, 1, 1], [], []>} : vector<128x4xf32>, vector<4x8xf32>, vector<128x8xf32> -> vector<128x8xf32>
      %70 = arith.addf %61, %69 : vector<128x8xf32>
      %c16_i32_46 = arith.constant 16 : i32
      %71 = arith.addi %8, %c16_i32_46 : i32
      %c0_i32_47 = arith.constant 0 : i32
      %72 = arith.addi %71, %c0_i32_47 : i32
      %c0_48 = arith.constant 0 : index
      %73 = arith.index_cast %72 : i32 to index
      %c0_49 = arith.constant 0 : index
      %74 = vector.load %arg3[%c0_48, %73, %c0_49] : memref<1x384x4xf32, #tpu.memory_space<vmem>>, vector<1x128x4xf32>
      %75 = vector.shape_cast %74 : vector<1x128x4xf32> to vector<128x4xf32>
      %c7 = arith.constant 7 : index
      %c0_50 = arith.constant 0 : index
      %c0_51 = arith.constant 0 : index
      %76 = vector.load %arg4[%c7, %c0_50, %c0_51] : memref<9x4x8xf32, #tpu.memory_space<vmem>>, vector<1x4x8xf32>
      %77 = vector.shape_cast %76 : vector<1x4x8xf32> to vector<4x8xf32>
      %cst_52 = arith.constant dense<0.000000e+00> : vector<128x8xf32>
      %78 = tpu.matmul %75, %77, %cst_52 {dimension_numbers = #tpu.dot_dimension_numbers<[1], [0], [0], [1], [0, 0, 1, 1], [], []>} : vector<128x4xf32>, vector<4x8xf32>, vector<128x8xf32> -> vector<128x8xf32>
      %79 = arith.addf %70, %78 : vector<128x8xf32>
      %c16_i32_53 = arith.constant 16 : i32
      %80 = arith.addi %8, %c16_i32_53 : i32
      %c1_i32_54 = arith.constant 1 : i32
      %81 = arith.addi %80, %c1_i32_54 : i32
      %c0_55 = arith.constant 0 : index
      %82 = arith.index_cast %81 : i32 to index
      %c0_56 = arith.constant 0 : index
      %83 = vector.load %arg3[%c0_55, %82, %c0_56] : memref<1x384x4xf32, #tpu.memory_space<vmem>>, vector<1x128x4xf32>
      %84 = vector.shape_cast %83 : vector<1x128x4xf32> to vector<128x4xf32>
      %c8 = arith.constant 8 : index
      %c0_57 = arith.constant 0 : index
      %c0_58 = arith.constant 0 : index
      %85 = vector.load %arg4[%c8, %c0_57, %c0_58] : memref<9x4x8xf32, #tpu.memory_space<vmem>>, vector<1x4x8xf32>
      %86 = vector.shape_cast %85 : vector<1x4x8xf32> to vector<4x8xf32>
      %cst_59 = arith.constant dense<0.000000e+00> : vector<128x8xf32>
      %87 = tpu.matmul %84, %86, %cst_59 {dimension_numbers = #tpu.dot_dimension_numbers<[1], [0], [0], [1], [0, 0, 1, 1], [], []>} : vector<128x4xf32>, vector<4x8xf32>, vector<128x8xf32> -> vector<128x8xf32>
      %88 = arith.addf %79, %87 : vector<128x8xf32>
      %c0_60 = arith.constant 0 : index
      %c0_61 = arith.constant 0 : index
      %89 = vector.load %arg5[%c0_60, %c0_61] : memref<1x8xf32, #tpu.memory_space<vmem>>, vector<1x8xf32>
      %90 = vector.broadcast %89 : vector<1x8xf32> to vector<128x8xf32>
      %91 = arith.addf %88, %90 : vector<128x8xf32>
      %cst_62 = arith.constant 0.000000e+00 : f32
      %92 = vector.broadcast %cst_62 : f32 to vector<128x8xf32>
      %93 = arith.maximumf %91, %92 : vector<128x8xf32>
      %94 = tpu.iota {dimensions = array<i32: 0>} : vector<128x1xi32>
      %c16_i32_63 = arith.constant 16 : i32
      %c0_i32_64 = arith.constant 0 : i32
      %95 = arith.cmpi eq, %c16_i32_63, %c0_i32_64 : i32
      %c1_i32_65 = arith.constant 1 : i32
      %96 = arith.select %95, %c1_i32_65, %c16_i32_63 : i32
      %97 = vector.broadcast %96 : i32 to vector<128x1xi32>
      %98 = arith.remsi %94, %97 : vector<128x1xi32>
      %c0_i32_66 = arith.constant 0 : i32
      %99 = vector.broadcast %c0_i32_66 : i32 to vector<128x1xi32>
      %100 = arith.cmpi ne, %98, %99 : vector<128x1xi32>
      %c0_i32_67 = arith.constant 0 : i32
      %101 = vector.broadcast %c0_i32_67 : i32 to vector<128x1xi32>
      %102 = arith.cmpi slt, %98, %101 : vector<128x1xi32>
      %c0_i32_68 = arith.constant 0 : i32
      %103 = arith.cmpi slt, %96, %c0_i32_68 : i32
      %104 = vector.broadcast %103 : i1 to vector<128x1xi1>
      %105 = vector.broadcast %104 : vector<128x1xi1> to vector<128x1xi1>
      %106 = arith.xori %102, %105 : vector<128x1xi1>
      %107 = arith.andi %106, %100 : vector<128x1xi1>
      %108 = vector.broadcast %96 : i32 to vector<128x1xi32>
      %109 = arith.addi %98, %108 : vector<128x1xi32>
      %110 = arith.select %107, %109, %98 : vector<128x1xi1>, vector<128x1xi32>
      %c1_i32_69 = arith.constant 1 : i32
      %111 = vector.broadcast %c1_i32_69 : i32 to vector<128x1xi32>
      %112 = arith.cmpi sge, %110, %111 : vector<128x1xi32>
      %c8_i32 = arith.constant 8 : i32
      %113 = vector.broadcast %c8_i32 : i32 to vector<128x1xi32>
      %114 = arith.cmpi sle, %110, %113 : vector<128x1xi32>
      %115 = arith.andi %112, %114 : vector<128x1xi1>
      %cst_70 = arith.constant 0.000000e+00 : f32
      %116 = vector.shape_cast %115 : vector<128x1xi1> to vector<128x1xi1>
      %117 = vector.broadcast %116 : vector<128x1xi1> to vector<128x8xi1>
      %118 = vector.broadcast %cst_70 : f32 to vector<128x8xf32>
      %119 = arith.select %117, %93, %118 : vector<128x8xi1>, vector<128x8xf32>
      %c0_71 = arith.constant 0 : index
      %c0_72 = arith.constant 0 : index
      %c0_73 = arith.constant 0 : index
      %120 = vector.load %arg6[%c0_71, %c0_72, %c0_73] : memref<1x128x8xf32, #tpu.memory_space<vmem>>, vector<1x128x8xf32>
      %121 = vector.shape_cast %120 : vector<1x128x8xf32> to vector<128x8xf32>
      %122 = vector.shape_cast %119 : vector<128x8xf32> to vector<1x128x8xf32>
      tpu.vector_store %arg6[%c0_71, %c0_72, %c0_73], %122 {strides = array<i32>} : memref<1x128x8xf32, #tpu.memory_space<vmem>>, vector<1x128x8xf32>,
    } else {
    }
    %true = arith.constant true
    %5 = arith.xori %2, %true : i1
    %6 = arith.extui %5 : i1 to i32
    %c0_i32_0 = arith.constant 0 : i32
    %7 = arith.cmpi ne, %6, %c0_i32_0 : i32
    scf.if %7 {
      %cst = arith.constant 0.000000e+00 : f32
      %8 = vector.broadcast %cst : f32 to vector<1x128x8xf32>
      %c0 = arith.constant 0 : index
      %c0_1 = arith.constant 0 : index
      %c0_2 = arith.constant 0 : index
      %9 = vector.load %arg6[%c0, %c0_1, %c0_2] : memref<1x128x8xf32, #tpu.memory_space<vmem>>, vector<1x128x8xf32>
      tpu.vector_store %arg6[%c0, %c0_1, %c0_2], %8 {strides = array<i32>} : memref<1x128x8xf32, #tpu.memory_space<vmem>>, vector<1x128x8xf32>,
    } else {
    }
    return
  }
  func.func @transform_0(%arg0: i32, %arg1: i32, %arg2: i32) -> (i32, i32, i32) {
    %c0_i32 = arith.constant 0 : i32
    %c0_i32_0 = arith.constant 0 : i32
    %c0_i32_1 = arith.constant 0 : i32
    return %arg0, %c0_i32, %c0_i32_0 : i32, i32, i32
  }
  func.func @transform_1(%arg0: i32, %arg1: i32, %arg2: i32) -> (i32, i32, i32) {
    %c0_i32 = arith.constant 0 : i32
    %c0_i32_0 = arith.constant 0 : i32
    %c0_i32_1 = arith.constant 0 : i32
    return %c0_i32, %c0_i32_0, %arg1 : i32, i32, i32
  }
  func.func @transform_2(%arg0: i32, %arg1: i32, %arg2: i32) -> (i32, i32) {
    %c0_i32 = arith.constant 0 : i32
    %c0_i32_0 = arith.constant 0 : i32
    return %c0_i32, %arg1 : i32, i32
  }
  func.func @transform_3(%arg0: i32, %arg1: i32, %arg2: i32) -> (i32, i32, i32) {
    %c0_i32 = arith.constant 0 : i32
    return %arg0, %arg2, %arg1 : i32, i32, i32
  }
}

module attributes {stable_mosaic.version = 11 : i64} {
  func.func @kernel(%arg0: i32, %arg1: i32, %arg2: i32, %arg3: memref<1x384x8xf32, #tpu.memory_space<vmem>>, %arg4: memref<9x8x8xf32, #tpu.memory_space<vmem>>, %arg5: memref<1x8xf32, #tpu.memory_space<vmem>>, %arg6: memref<1x128x8xf32, #tpu.memory_space<vmem>>) attributes {dimension_semantics = [#tpu.dimension_semantics<parallel>, #tpu.dimension_semantics<parallel>, #tpu.dimension_semantics<parallel>], iteration_bounds = array<i64: 2, 1, 3>, scalar_prefetch = 0 : i64, scratch_operands = 0 : i64, tpu.core_type = #tpu.core_type<tc>, window_params = [{transform_indices = @transform_0, window_bounds = array<i64: 1, 384, 8>}, {transform_indices = @transform_1, window_bounds = array<i64: 9, 8, 8>}, {transform_indices = @transform_2, window_bounds = array<i64: 1, 8>}, {transform_indices = @transform_3, window_bounds = array<i64: 1, 128, 8>}]} {
    %c1_i32 = arith.constant 1 : i32
    %0 = arith.cmpi sge, %arg2, %c1_i32 : i32
    %c2_i32 = arith.constant 2 : i32
    %1 = arith.cmpi slt, %arg2, %c2_i32 : i32
    %2 = arith.andi %0, %1 : i1
    %3 = arith.extui %2 : i1 to i32
    %c0_i32 = arith.constant 0 : i32
    %4 = arith.cmpi ne, %3, %c0_i32 : i32
    scf.if %4 {
      %c128_i32 = arith.constant 128 : i32
      %8 = arith.muli %arg2, %c128_i32 : i32
      %c-16_i32 = arith.constant -16 : i32
      %9 = arith.addi %8, %c-16_i32 : i32
      %c-1_i32 = arith.constant -1 : i32
      %10 = arith.addi %9, %c-1_i32 : i32
      %c0 = arith.constant 0 : index
      %11 = arith.index_cast %10 : i32 to index
      %c0_1 = arith.constant 0 : index
      %12 = vector.load %arg3[%c0, %11, %c0_1] : memref<1x384x8xf32, #tpu.memory_space<vmem>>, vector<1x128x8xf32>
      %13 = vector.shape_cast %12 : vector<1x128x8xf32> to vector<128x8xf32>
      %c0_2 = arith.constant 0 : index
      %c0_3 = arith.constant 0 : index
      %c0_4 = arith.constant 0 : index
      %14 = vector.load %arg4[%c0_2, %c0_3, %c0_4] : memref<9x8x8xf32, #tpu.memory_space<vmem>>, vector<1x8x8xf32>
      %15 = vector.shape_cast %14 : vector<1x8x8xf32> to vector<8x8xf32>
      %cst = arith.constant dense<0.000000e+00> : vector<128x8xf32>
      %16 = tpu.matmul %13, %15, %cst {dimension_numbers = #tpu.dot_dimension_numbers<[1], [0], [0], [1], [0, 0, 1, 1], [], []>} : vector<128x8xf32>, vector<8x8xf32>, vector<128x8xf32> -> vector<128x8xf32>
      %c-16_i32_5 = arith.constant -16 : i32
      %17 = arith.addi %8, %c-16_i32_5 : i32
      %c0_i32_6 = arith.constant 0 : i32
      %18 = arith.addi %17, %c0_i32_6 : i32
      %c0_7 = arith.constant 0 : index
      %19 = arith.index_cast %18 : i32 to index
      %c0_8 = arith.constant 0 : index
      %20 = vector.load %arg3[%c0_7, %19, %c0_8] : memref<1x384x8xf32, #tpu.memory_space<vmem>>, vector<1x128x8xf32>
      %21 = vector.shape_cast %20 : vector<1x128x8xf32> to vector<128x8xf32>
      %c1 = arith.constant 1 : index
      %c0_9 = arith.constant 0 : index
      %c0_10 = arith.constant 0 : index
      %22 = vector.load %arg4[%c1, %c0_9, %c0_10] : memref<9x8x8xf32, #tpu.memory_space<vmem>>, vector<1x8x8xf32>
      %23 = vector.shape_cast %22 : vector<1x8x8xf32> to vector<8x8xf32>
      %cst_11 = arith.constant dense<0.000000e+00> : vector<128x8xf32>
      %24 = tpu.matmul %21, %23, %cst_11 {dimension_numbers = #tpu.dot_dimension_numbers<[1], [0], [0], [1], [0, 0, 1, 1], [], []>} : vector<128x8xf32>, vector<8x8xf32>, vector<128x8xf32> -> vector<128x8xf32>
      %25 = arith.addf %16, %24 : vector<128x8xf32>
      %c-16_i32_12 = arith.constant -16 : i32
      %26 = arith.addi %8, %c-16_i32_12 : i32
      %c1_i32_13 = arith.constant 1 : i32
      %27 = arith.addi %26, %c1_i32_13 : i32
      %c0_14 = arith.constant 0 : index
      %28 = arith.index_cast %27 : i32 to index
      %c0_15 = arith.constant 0 : index
      %29 = vector.load %arg3[%c0_14, %28, %c0_15] : memref<1x384x8xf32, #tpu.memory_space<vmem>>, vector<1x128x8xf32>
      %30 = vector.shape_cast %29 : vector<1x128x8xf32> to vector<128x8xf32>
      %c2 = arith.constant 2 : index
      %c0_16 = arith.constant 0 : index
      %c0_17 = arith.constant 0 : index
      %31 = vector.load %arg4[%c2, %c0_16, %c0_17] : memref<9x8x8xf32, #tpu.memory_space<vmem>>, vector<1x8x8xf32>
      %32 = vector.shape_cast %31 : vector<1x8x8xf32> to vector<8x8xf32>
      %cst_18 = arith.constant dense<0.000000e+00> : vector<128x8xf32>
      %33 = tpu.matmul %30, %32, %cst_18 {dimension_numbers = #tpu.dot_dimension_numbers<[1], [0], [0], [1], [0, 0, 1, 1], [], []>} : vector<128x8xf32>, vector<8x8xf32>, vector<128x8xf32> -> vector<128x8xf32>
      %34 = arith.addf %25, %33 : vector<128x8xf32>
      %c0_i32_19 = arith.constant 0 : i32
      %35 = arith.addi %8, %c0_i32_19 : i32
      %c-1_i32_20 = arith.constant -1 : i32
      %36 = arith.addi %35, %c-1_i32_20 : i32
      %c0_21 = arith.constant 0 : index
      %37 = arith.index_cast %36 : i32 to index
      %c0_22 = arith.constant 0 : index
      %38 = vector.load %arg3[%c0_21, %37, %c0_22] : memref<1x384x8xf32, #tpu.memory_space<vmem>>, vector<1x128x8xf32>
      %39 = vector.shape_cast %38 : vector<1x128x8xf32> to vector<128x8xf32>
      %c3 = arith.constant 3 : index
      %c0_23 = arith.constant 0 : index
      %c0_24 = arith.constant 0 : index
      %40 = vector.load %arg4[%c3, %c0_23, %c0_24] : memref<9x8x8xf32, #tpu.memory_space<vmem>>, vector<1x8x8xf32>
      %41 = vector.shape_cast %40 : vector<1x8x8xf32> to vector<8x8xf32>
      %cst_25 = arith.constant dense<0.000000e+00> : vector<128x8xf32>
      %42 = tpu.matmul %39, %41, %cst_25 {dimension_numbers = #tpu.dot_dimension_numbers<[1], [0], [0], [1], [0, 0, 1, 1], [], []>} : vector<128x8xf32>, vector<8x8xf32>, vector<128x8xf32> -> vector<128x8xf32>
      %43 = arith.addf %34, %42 : vector<128x8xf32>
      %c0_i32_26 = arith.constant 0 : i32
      %44 = arith.addi %8, %c0_i32_26 : i32
      %c0_i32_27 = arith.constant 0 : i32
      %45 = arith.addi %44, %c0_i32_27 : i32
      %c0_28 = arith.constant 0 : index
      %46 = arith.index_cast %45 : i32 to index
      %c0_29 = arith.constant 0 : index
      %47 = vector.load %arg3[%c0_28, %46, %c0_29] : memref<1x384x8xf32, #tpu.memory_space<vmem>>, vector<1x128x8xf32>
      %48 = vector.shape_cast %47 : vector<1x128x8xf32> to vector<128x8xf32>
      %c4 = arith.constant 4 : index
      %c0_30 = arith.constant 0 : index
      %c0_31 = arith.constant 0 : index
      %49 = vector.load %arg4[%c4, %c0_30, %c0_31] : memref<9x8x8xf32, #tpu.memory_space<vmem>>, vector<1x8x8xf32>
      %50 = vector.shape_cast %49 : vector<1x8x8xf32> to vector<8x8xf32>
      %cst_32 = arith.constant dense<0.000000e+00> : vector<128x8xf32>
      %51 = tpu.matmul %48, %50, %cst_32 {dimension_numbers = #tpu.dot_dimension_numbers<[1], [0], [0], [1], [0, 0, 1, 1], [], []>} : vector<128x8xf32>, vector<8x8xf32>, vector<128x8xf32> -> vector<128x8xf32>
      %52 = arith.addf %43, %51 : vector<128x8xf32>
      %c0_i32_33 = arith.constant 0 : i32
      %53 = arith.addi %8, %c0_i32_33 : i32
      %c1_i32_34 = arith.constant 1 : i32
      %54 = arith.addi %53, %c1_i32_34 : i32
      %c0_35 = arith.constant 0 : index
      %55 = arith.index_cast %54 : i32 to index
      %c0_36 = arith.constant 0 : index
      %56 = vector.load %arg3[%c0_35, %55, %c0_36] : memref<1x384x8xf32, #tpu.memory_space<vmem>>, vector<1x128x8xf32>
      %57 = vector.shape_cast %56 : vector<1x128x8xf32> to vector<128x8xf32>
      %c5 = arith.constant 5 : index
      %c0_37 = arith.constant 0 : index
      %c0_38 = arith.constant 0 : index
      %58 = vector.load %arg4[%c5, %c0_37, %c0_38] : memref<9x8x8xf32, #tpu.memory_space<vmem>>, vector<1x8x8xf32>
      %59 = vector.shape_cast %58 : vector<1x8x8xf32> to vector<8x8xf32>
      %cst_39 = arith.constant dense<0.000000e+00> : vector<128x8xf32>
      %60 = tpu.matmul %57, %59, %cst_39 {dimension_numbers = #tpu.dot_dimension_numbers<[1], [0], [0], [1], [0, 0, 1, 1], [], []>} : vector<128x8xf32>, vector<8x8xf32>, vector<128x8xf32> -> vector<128x8xf32>
      %61 = arith.addf %52, %60 : vector<128x8xf32>
      %c16_i32 = arith.constant 16 : i32
      %62 = arith.addi %8, %c16_i32 : i32
      %c-1_i32_40 = arith.constant -1 : i32
      %63 = arith.addi %62, %c-1_i32_40 : i32
      %c0_41 = arith.constant 0 : index
      %64 = arith.index_cast %63 : i32 to index
      %c0_42 = arith.constant 0 : index
      %65 = vector.load %arg3[%c0_41, %64, %c0_42] : memref<1x384x8xf32, #tpu.memory_space<vmem>>, vector<1x128x8xf32>
      %66 = vector.shape_cast %65 : vector<1x128x8xf32> to vector<128x8xf32>
      %c6 = arith.constant 6 : index
      %c0_43 = arith.constant 0 : index
      %c0_44 = arith.constant 0 : index
      %67 = vector.load %arg4[%c6, %c0_43, %c0_44] : memref<9x8x8xf32, #tpu.memory_space<vmem>>, vector<1x8x8xf32>
      %68 = vector.shape_cast %67 : vector<1x8x8xf32> to vector<8x8xf32>
      %cst_45 = arith.constant dense<0.000000e+00> : vector<128x8xf32>
      %69 = tpu.matmul %66, %68, %cst_45 {dimension_numbers = #tpu.dot_dimension_numbers<[1], [0], [0], [1], [0, 0, 1, 1], [], []>} : vector<128x8xf32>, vector<8x8xf32>, vector<128x8xf32> -> vector<128x8xf32>
      %70 = arith.addf %61, %69 : vector<128x8xf32>
      %c16_i32_46 = arith.constant 16 : i32
      %71 = arith.addi %8, %c16_i32_46 : i32
      %c0_i32_47 = arith.constant 0 : i32
      %72 = arith.addi %71, %c0_i32_47 : i32
      %c0_48 = arith.constant 0 : index
      %73 = arith.index_cast %72 : i32 to index
      %c0_49 = arith.constant 0 : index
      %74 = vector.load %arg3[%c0_48, %73, %c0_49] : memref<1x384x8xf32, #tpu.memory_space<vmem>>, vector<1x128x8xf32>
      %75 = vector.shape_cast %74 : vector<1x128x8xf32> to vector<128x8xf32>
      %c7 = arith.constant 7 : index
      %c0_50 = arith.constant 0 : index
      %c0_51 = arith.constant 0 : index
      %76 = vector.load %arg4[%c7, %c0_50, %c0_51] : memref<9x8x8xf32, #tpu.memory_space<vmem>>, vector<1x8x8xf32>
      %77 = vector.shape_cast %76 : vector<1x8x8xf32> to vector<8x8xf32>
      %cst_52 = arith.constant dense<0.000000e+00> : vector<128x8xf32>
      %78 = tpu.matmul %75, %77, %cst_52 {dimension_numbers = #tpu.dot_dimension_numbers<[1], [0], [0], [1], [0, 0, 1, 1], [], []>} : vector<128x8xf32>, vector<8x8xf32>, vector<128x8xf32> -> vector<128x8xf32>
      %79 = arith.addf %70, %78 : vector<128x8xf32>
      %c16_i32_53 = arith.constant 16 : i32
      %80 = arith.addi %8, %c16_i32_53 : i32
      %c1_i32_54 = arith.constant 1 : i32
      %81 = arith.addi %80, %c1_i32_54 : i32
      %c0_55 = arith.constant 0 : index
      %82 = arith.index_cast %81 : i32 to index
      %c0_56 = arith.constant 0 : index
      %83 = vector.load %arg3[%c0_55, %82, %c0_56] : memref<1x384x8xf32, #tpu.memory_space<vmem>>, vector<1x128x8xf32>
      %84 = vector.shape_cast %83 : vector<1x128x8xf32> to vector<128x8xf32>
      %c8 = arith.constant 8 : index
      %c0_57 = arith.constant 0 : index
      %c0_58 = arith.constant 0 : index
      %85 = vector.load %arg4[%c8, %c0_57, %c0_58] : memref<9x8x8xf32, #tpu.memory_space<vmem>>, vector<1x8x8xf32>
      %86 = vector.shape_cast %85 : vector<1x8x8xf32> to vector<8x8xf32>
      %cst_59 = arith.constant dense<0.000000e+00> : vector<128x8xf32>
      %87 = tpu.matmul %84, %86, %cst_59 {dimension_numbers = #tpu.dot_dimension_numbers<[1], [0], [0], [1], [0, 0, 1, 1], [], []>} : vector<128x8xf32>, vector<8x8xf32>, vector<128x8xf32> -> vector<128x8xf32>
      %88 = arith.addf %79, %87 : vector<128x8xf32>
      %c0_60 = arith.constant 0 : index
      %c0_61 = arith.constant 0 : index
      %89 = vector.load %arg5[%c0_60, %c0_61] : memref<1x8xf32, #tpu.memory_space<vmem>>, vector<1x8xf32>
      %90 = vector.broadcast %89 : vector<1x8xf32> to vector<128x8xf32>
      %91 = arith.addf %88, %90 : vector<128x8xf32>
      %cst_62 = arith.constant 0.000000e+00 : f32
      %92 = vector.broadcast %cst_62 : f32 to vector<128x8xf32>
      %93 = arith.maximumf %91, %92 : vector<128x8xf32>
      %94 = tpu.iota {dimensions = array<i32: 0>} : vector<128x1xi32>
      %c16_i32_63 = arith.constant 16 : i32
      %c0_i32_64 = arith.constant 0 : i32
      %95 = arith.cmpi eq, %c16_i32_63, %c0_i32_64 : i32
      %c1_i32_65 = arith.constant 1 : i32
      %96 = arith.select %95, %c1_i32_65, %c16_i32_63 : i32
      %97 = vector.broadcast %96 : i32 to vector<128x1xi32>
      %98 = arith.remsi %94, %97 : vector<128x1xi32>
      %c0_i32_66 = arith.constant 0 : i32
      %99 = vector.broadcast %c0_i32_66 : i32 to vector<128x1xi32>
      %100 = arith.cmpi ne, %98, %99 : vector<128x1xi32>
      %c0_i32_67 = arith.constant 0 : i32
      %101 = vector.broadcast %c0_i32_67 : i32 to vector<128x1xi32>
      %102 = arith.cmpi slt, %98, %101 : vector<128x1xi32>
      %c0_i32_68 = arith.constant 0 : i32
      %103 = arith.cmpi slt, %96, %c0_i32_68 : i32
      %104 = vector.broadcast %103 : i1 to vector<128x1xi1>
      %105 = vector.broadcast %104 : vector<128x1xi1> to vector<128x1xi1>
      %106 = arith.xori %102, %105 : vector<128x1xi1>
      %107 = arith.andi %106, %100 : vector<128x1xi1>
      %108 = vector.broadcast %96 : i32 to vector<128x1xi32>
      %109 = arith.addi %98, %108 : vector<128x1xi32>
      %110 = arith.select %107, %109, %98 : vector<128x1xi1>, vector<128x1xi32>
      %c1_i32_69 = arith.constant 1 : i32
      %111 = vector.broadcast %c1_i32_69 : i32 to vector<128x1xi32>
      %112 = arith.cmpi sge, %110, %111 : vector<128x1xi32>
      %c8_i32 = arith.constant 8 : i32
      %113 = vector.broadcast %c8_i32 : i32 to vector<128x1xi32>
      %114 = arith.cmpi sle, %110, %113 : vector<128x1xi32>
      %115 = arith.andi %112, %114 : vector<128x1xi1>
      %cst_70 = arith.constant 0.000000e+00 : f32
      %116 = vector.shape_cast %115 : vector<128x1xi1> to vector<128x1xi1>
      %117 = vector.broadcast %116 : vector<128x1xi1> to vector<128x8xi1>
      %118 = vector.broadcast %cst_70 : f32 to vector<128x8xf32>
      %119 = arith.select %117, %93, %118 : vector<128x8xi1>, vector<128x8xf32>
      %c0_71 = arith.constant 0 : index
      %c0_72 = arith.constant 0 : index
      %c0_73 = arith.constant 0 : index
      %120 = vector.load %arg6[%c0_71, %c0_72, %c0_73] : memref<1x128x8xf32, #tpu.memory_space<vmem>>, vector<1x128x8xf32>
      %121 = vector.shape_cast %120 : vector<1x128x8xf32> to vector<128x8xf32>
      %122 = vector.shape_cast %119 : vector<128x8xf32> to vector<1x128x8xf32>
      tpu.vector_store %arg6[%c0_71, %c0_72, %c0_73], %122 {strides = array<i32>} : memref<1x128x8xf32, #tpu.memory_space<vmem>>, vector<1x128x8xf32>,
    } else {
    }
    %true = arith.constant true
    %5 = arith.xori %2, %true : i1
    %6 = arith.extui %5 : i1 to i32
    %c0_i32_0 = arith.constant 0 : i32
    %7 = arith.cmpi ne, %6, %c0_i32_0 : i32
    scf.if %7 {
      %cst = arith.constant 0.000000e+00 : f32
      %8 = vector.broadcast %cst : f32 to vector<1x128x8xf32>
      %c0 = arith.constant 0 : index
      %c0_1 = arith.constant 0 : index
      %c0_2 = arith.constant 0 : index
      %9 = vector.load %arg6[%c0, %c0_1, %c0_2] : memref<1x128x8xf32, #tpu.memory_space<vmem>>, vector<1x128x8xf32>
      tpu.vector_store %arg6[%c0, %c0_1, %c0_2], %8 {strides = array<i32>} : memref<1x128x8xf32, #tpu.memory_space<vmem>>, vector<1x128x8xf32>,
    } else {
    }
    return
  }
  func.func @transform_0(%arg0: i32, %arg1: i32, %arg2: i32) -> (i32, i32, i32) {
    %c0_i32 = arith.constant 0 : i32
    %c0_i32_0 = arith.constant 0 : i32
    %c0_i32_1 = arith.constant 0 : i32
    return %arg0, %c0_i32, %c0_i32_0 : i32, i32, i32
  }
  func.func @transform_1(%arg0: i32, %arg1: i32, %arg2: i32) -> (i32, i32, i32) {
    %c0_i32 = arith.constant 0 : i32
    %c0_i32_0 = arith.constant 0 : i32
    %c0_i32_1 = arith.constant 0 : i32
    return %c0_i32, %c0_i32_0, %arg1 : i32, i32, i32
  }
  func.func @transform_2(%arg0: i32, %arg1: i32, %arg2: i32) -> (i32, i32) {
    %c0_i32 = arith.constant 0 : i32
    %c0_i32_0 = arith.constant 0 : i32
    return %c0_i32, %arg1 : i32, i32
  }
  func.func @transform_3(%arg0: i32, %arg1: i32, %arg2: i32) -> (i32, i32, i32) {
    %c0_i32 = arith.constant 0 : i32
    return %arg0, %arg2, %arg1 : i32, i32, i32
  }
}

</mosaic_0001>

<bundles_post_ra>
// kernel: down_block2.3
= control target key start
LH: loop header
LB: loop body
LE: loop exit
PB: predicated region body
PF: predicated region fallthrough
CT: control target
= control target key end

     0   :  { %s549_s6 = smov 0   ;;  %s551_s7 = smov 0   ;;  %s674_s0 = inlined_call_operand.vmem [shape: f32[2,8,2,8,8], index: 0, kind: input, shape index: {}]   ;;  %s675_s1 = inlined_call_operand.vmem [shape: f32[2,384,4], index: 1, kind: output, shape index: {}]  }
   0x1   :  { %s553_s8 = smov 0   ;;  %s555_s9 = smov 0  }
   0x2   :  { %s557_s10 = smov 0  }
   0x3 LB: > { %s20_s11 = sadd.s32 1, %s527_s8  ;;  %s23_s12 = sadd.s32 1, %s531_s9  ;;  %s535_s10 = sphi %s557_s10, %s11_s10   ;;  %s531_s9 = sphi %s555_s9, %s680_s9   ;;  %s527_s8 = sphi %s553_s8, %s679_s8   ;;  %s523_s7 = sphi %s551_s7, %s678_s7   ;;  %s519_s6 = sphi %s549_s6, %s677_s6  }
   0x4   : > { %p21_p0 = scmp.ge.s32.totalorder %s20_s11, 3  ;;  %p438_p1 = scmp.ge.s32.totalorder %s535_s10, 1 }
   0x5   : > { %p129_p2 = scmp.lt.s32.totalorder %s535_s10, 7 }
   0x6   : > { %s682_s11 = smov (%p21_p0, %s20_s11), 0  ;;  %s684_s12 = smov (!%p21_p0, %s23_s12), %s531_s9 }
   0x7   : > { %p130_p3 = pnand %p438_p1, %p129_p2  ;;  %p25_p4 = scmp.ge.s32.totalorder %s684_s12, 2 }
   0x8   : > { %p169_p5 = scmp.lt.s32.totalorder (!%p130_p3), %s523_s7, 1  ;;  %s449_s13 = sshll.u32 (!%p130_p3), %s519_s6, 4  ;;  %vm194_vm0 = vcmask (!%p130_p3), 31744   ;;  %v537_v0 = vmov (!%p130_p3), 0.0  }
   0x9   : > { %s686_s12 = smov (%p25_p4, %s684_s12), 0  ;;  %133 = sbr.rel (%p130_p3) target bundleno = 168 (0xa8), region = 24 }
   0xa   : > { %p187_p6 = scmp.lt.s32.totalorder (!%p130_p3), %s449_s13, 47  ;;  %p211_p7 = scmp.ge.s32.totalorder (!%p130_p3), %s519_s6, 1 }
   0xb   : > { %p212_p8 = scmp.lt.s32.totalorder (!%p130_p3), %s519_s6, 2 }
   0xd   : > { %p584_p9 = pnand (!%p130_p3), %p212_p8, %p211_p7 }
  0x10   : > { %s688_s7 = smov (!%p169_p5, %s523_s7), 1  ;;  %s690_s13 = smov (!%p187_p6, %s449_s13), 47 }
  0x11   : > { %s453_s14 = sshll.u32 %s688_s7, 7  ;;  %s454_s15 = smul.u32 48, %s688_s7 }
  0x12   : > { %s582_s18 = scalar_lea.vmem %s674_s0, %s453_s14  ;;  %s538_s25 = smov (!%p584_p9), 124  }
  0x13   : > { %s190_s19 = sadd.s32 %s454_s15, %s690_s13  ;;  %v219_v1 = vld [vmem:[%s582_s18 + $0x10] sm:$0xff] (!%p584_p9)  ;;  %v217_v2 = vld [vmem:[%s582_s18] sm:$0xff] (!%p584_p9)  ;;  %v220_v3 = vld [vmem:[%s582_s18 + $0x18] sm:$0xff] (!%p584_p9) }
  0x14   : > { %s450_s20 = sshll.u32 %s190_s19, 3  ;;  %253 = vrot.lane.b32.xlu1 (!%p584_p9), %v219_v1, %s538_s25  ;;  %249 = vrot.lane.b32.xlu0 (!%p584_p9), %v217_v2, %s538_s25  ;;  %v218_v4 = vld [vmem:[%s582_s18 + $0x8] sm:$0xff] (!%p584_p9)  ;;  %v221_v6 = vld [vmem:[%s582_s18 + $0x20] sm:$0xff] (!%p584_p9) }
  0x15   : > { %s591_s24 = scalar_lea.vmem %s675_s1, %s450_s20  ;;  %v222_v5 = vld [vmem:[%s582_s18 + $0x28] sm:$0xff] (!%p584_p9)  ;;  %v224_v7 = vld [vmem:[%s582_s18 + $0x38] sm:$0xff] (!%p584_p9)  ;;  %v223_v8 = vld [vmem:[%s582_s18 + $0x30] sm:$0xff] (!%p584_p9) }
  0x16   : > { %195 = vst.msk [vmem:[%s591_s24] sm:$0xff] %vm194_vm0, %v537_v0  ;;  %196 = vst.msk [vmem:[%s591_s24 + $0x8] sm:$0xff] %vm194_vm0, %v537_v0  ;;  %v226_v9 = vld [vmem:[%s582_s18 + $0x48] sm:$0xff] (!%p584_p9)  ;;  %v225_v10 = vld [vmem:[%s582_s18 + $0x40] sm:$0xff] (!%p584_p9) }
  0x17   : > { %197 = vst.msk [vmem:[%s591_s24 + $0x10] sm:$0xff] %vm194_vm0, %v537_v0  ;;  %198 = vst.msk [vmem:[%s591_s24 + $0x18] sm:$0xff] %vm194_vm0, %v537_v0  ;;  %216 = sbr.rel (%p584_p9) target bundleno = 168 (0xa8), region = 28  ;;  %v228_v11 = vld [vmem:[%s582_s18 + $0x58] sm:$0xff] (!%p584_p9)  ;;  %v227_v12 = vld [vmem:[%s582_s18 + $0x50] sm:$0xff] (!%p584_p9) }
  0x18   : > { %199 = vst.msk [vmem:[%s591_s24 + $0x20] sm:$0xff] %vm194_vm0, %v537_v0  ;;  %200 = vst.msk [vmem:[%s591_s24 + $0x28] sm:$0xff] %vm194_vm0, %v537_v0  ;;  %255 = vrot.lane.b32.xlu1 (!%p584_p9), %v220_v3, %s538_s25  ;;  %251 = vrot.lane.b32.xlu0 (!%p584_p9), %v218_v4, %s538_s25 }
  0x19   : > { %201 = vst.msk [vmem:[%s591_s24 + $0x30] sm:$0xff] %vm194_vm0, %v537_v0  ;;  %202 = vst.msk [vmem:[%s591_s24 + $0x38] sm:$0xff] %vm194_vm0, %v537_v0  ;;  %v230_v13 = vld [vmem:[%s582_s18 + $0x68] sm:$0xff] (!%p584_p9)  ;;  %v229_v14 = vld [vmem:[%s582_s18 + $0x60] sm:$0xff] (!%p584_p9) }
  0x1a   : > { %203 = vst.msk [vmem:[%s591_s24 + $0x40] sm:$0xff] %vm194_vm0, %v537_v0  ;;  %204 = vst.msk [vmem:[%s591_s24 + $0x48] sm:$0xff] %vm194_vm0, %v537_v0  ;;  %v232_v15 = vld [vmem:[%s582_s18 + $0x78] sm:$0xff] (!%p584_p9)  ;;  %v231_v16 = vld [vmem:[%s582_s18 + $0x70] sm:$0xff] (!%p584_p9) }
  0x1b   : > { %205 = vst.msk [vmem:[%s591_s24 + $0x50] sm:$0xff] %vm194_vm0, %v537_v0  ;;  %206 = vst.msk [vmem:[%s591_s24 + $0x58] sm:$0xff] %vm194_vm0, %v537_v0 }
  0x1c   : > { %207 = vst.msk [vmem:[%s591_s24 + $0x60] sm:$0xff] %vm194_vm0, %v537_v0  ;;  %208 = vst.msk [vmem:[%s591_s24 + $0x68] sm:$0xff] %vm194_vm0, %v537_v0  ;;  %259 = vrot.lane.b32.xlu1 (!%p584_p9), %v222_v5, %s538_s25  ;;  %257 = vrot.lane.b32.xlu0 (!%p584_p9), %v221_v6, %s538_s25 }
  0x1d   : > { %209 = vst.msk [vmem:[%s591_s24 + $0x70] sm:$0xff] %vm194_vm0, %v537_v0  ;;  %210 = vst.msk [vmem:[%s591_s24 + $0x78] sm:$0xff] %vm194_vm0, %v537_v0 }
  0x20   : > { %263 = vrot.lane.b32.xlu1 %v224_v7, %s538_s25  ;;  %261 = vrot.lane.b32.xlu0 %v223_v8, %s538_s25 }
  0x24   : > { %267 = vrot.lane.b32.xlu1 %v226_v9, %s538_s25  ;;  %265 = vrot.lane.b32.xlu0 %v225_v10, %s538_s25 }
  0x28   : > { %271 = vrot.lane.b32.xlu1 %v228_v11, %s538_s25  ;;  %269 = vrot.lane.b32.xlu0 %v227_v12, %s538_s25 }
  0x2c   : > { %275 = vrot.lane.b32.xlu1 %v230_v13, %s538_s25  ;;  %273 = vrot.lane.b32.xlu0 %v229_v14, %s538_s25 }
  0x30   : > { %279 = vrot.lane.b32.xlu1 %v232_v15, %s538_s25  ;;  %277 = vrot.lane.b32.xlu0 %v231_v16, %s538_s25 }
  0x86   : > { %v254_v17 = vpop.permute.xlu1 %253  ;;  %v250_v18 = vpop.permute.xlu0 %249 }
  0x87   : > { %v299_v21 = vmax.f32 %v219_v1, %v254_v17  ;;  %v297_v22 = vmax.f32 %v217_v2, %v250_v18 }
  0x8a   : > { %v256_v19 = vpop.permute.xlu1 %255  ;;  %v252_v20 = vpop.permute.xlu0 %251 }
  0x8b   : > { %v300_v23 = vmax.f32 %v220_v3, %v256_v19  ;;  %v298_v24 = vmax.f32 %v218_v4, %v252_v20 }
  0x8d   : > { %v314_v25 = vmax.f32 %v299_v21, %v300_v23  ;;  %v313_v26 = vmax.f32 %v297_v22, %v298_v24 }
  0x8e   : > { %v260_v27 = vpop.permute.xlu1 %259  ;;  %v258_v28 = vpop.permute.xlu0 %257 }
  0x8f   : > { %322 = vst.msk [vmem:[%s591_s24 + $0x11] sm:$0xff] %vm194_vm0, %v314_v25  ;;  %321 = vst.msk [vmem:[%s591_s24 + $0x1] sm:$0xff] %vm194_vm0, %v313_v26  ;;  %v302_v29 = vmax.f32 %v222_v5, %v260_v27  ;;  %v301_v30 = vmax.f32 %v221_v6, %v258_v28 }
  0x91   : > { %v315_v31 = vmax.f32 %v301_v30, %v302_v29 }
  0x92   : > { %v264_v32 = vpop.permute.xlu1 %263  ;;  %v262_v33 = vpop.permute.xlu0 %261 }
  0x93   : > { %323 = vst.msk [vmem:[%s591_s24 + $0x21] sm:$0xff] %vm194_vm0, %v315_v31  ;;  %v304_v34 = vmax.f32 %v224_v7, %v264_v32  ;;  %v303_v35 = vmax.f32 %v223_v8, %v262_v33 }
  0x95   : > { %v316_v36 = vmax.f32 %v303_v35, %v304_v34 }
  0x96   : > { %v268_v37 = vpop.permute.xlu1 %267  ;;  %v266_v38 = vpop.permute.xlu0 %265 }
  0x97   : > { %324 = vst.msk [vmem:[%s591_s24 + $0x31] sm:$0xff] %vm194_vm0, %v316_v36  ;;  %v306_v39 = vmax.f32 %v226_v9, %v268_v37  ;;  %v305_v40 = vmax.f32 %v225_v10, %v266_v38 }
  0x99   : > { %v317_v41 = vmax.f32 %v305_v40, %v306_v39 }
  0x9a   : > { %v272_v42 = vpop.permute.xlu1 %271  ;;  %v270_v43 = vpop.permute.xlu0 %269 }
  0x9b   : > { %325 = vst.msk [vmem:[%s591_s24 + $0x41] sm:$0xff] %vm194_vm0, %v317_v41  ;;  %v308_v44 = vmax.f32 %v228_v11, %v272_v42  ;;  %v307_v45 = vmax.f32 %v227_v12, %v270_v43 }
  0x9d   : > { %v318_v46 = vmax.f32 %v307_v45, %v308_v44 }
  0x9e   : > { %v276_v47 = vpop.permute.xlu1 %275  ;;  %v274_v48 = vpop.permute.xlu0 %273 }
  0x9f   : > { %326 = vst.msk [vmem:[%s591_s24 + $0x51] sm:$0xff] %vm194_vm0, %v318_v46  ;;  %v310_v49 = vmax.f32 %v230_v13, %v276_v47  ;;  %v309_v50 = vmax.f32 %v229_v14, %v274_v48 }
  0xa1   : > { %v319_v51 = vmax.f32 %v309_v50, %v310_v49 }
  0xa2   : > { %v280_v52 = vpop.permute.xlu1 %279  ;;  %v278_v53 = vpop.permute.xlu0 %277 }
  0xa3   : > { %327 = vst.msk [vmem:[%s591_s24 + $0x61] sm:$0xff] %vm194_vm0, %v319_v51  ;;  %v312_v54 = vmax.f32 %v232_v15, %v280_v52  ;;  %v311_v55 = vmax.f32 %v231_v16, %v278_v53 }
  0xa5   : > { %v320_v56 = vmax.f32 %v311_v55, %v312_v54 }
  0xa7   : > { %328 = vst.msk [vmem:[%s591_s24 + $0x71] sm:$0xff] %vm194_vm0, %v320_v56 }
  0xa8 PF: > { %s11_s10 = sadd.s32 1, %s535_s10   ;;  %s677_s6 = smov %s527_s8 }
  0xa9   : > { %p8_p10 = scmp.ge.s32.totalorder %s11_s10, 8   ;;  %s678_s7 = smov %s531_s9 }
  0xaa   : > { %s679_s8 = smov %s682_s11  ;;  %s680_s9 = smov %s686_s12 }
  0xab   :  { %10 = sbr.rel (!%p8_p10) target bundleno = 3 (0x3), region = 58 }

// kernel: down_block2.4
= control target key start
LH: loop header
LB: loop body
LE: loop exit
PB: predicated region body
PF: predicated region fallthrough
CT: control target
= control target key end

     0   :  { %s3766_s12 = smov 0   ;;  %s3768_s13 = smov 0   ;;  %s4431_s0 = inlined_call_operand.vmem [shape: f32[2,384,4], index: 0, kind: input, shape index: {}]   ;;  %s4432_s1 = inlined_call_operand.vmem [shape: f32[9,4,8], index: 1, kind: input, shape index: {}]   ;;  %s4433_s2 = inlined_call_operand.vmem [shape: f32[1,8], index: 2, kind: input, shape index: {}]   ;;  %s4434_s3 = inlined_call_operand.vmem [shape: f32[2,384,8], index: 3, kind: output, shape index: {}]  }
   0x1   :  { %s3770_s14 = smov 0   ;;  %s3772_s15 = smov 0  }
   0x2   :  { %s3774_s16 = smov 0  }
   0x3 LB: > { %s25_s17 = sadd.s32 1, %s3735_s14  ;;  %s32_s18 = sadd.s32 1, %s3739_s15  ;;  %s3743_s16 = sphi %s3774_s16, %s13_s16   ;;  %s3739_s15 = sphi %s3772_s15, %s4447_s15   ;;  %s3735_s14 = sphi %s3770_s14, %s4446_s14   ;;  %s3731_s13 = sphi %s3768_s13, %s4445_s13   ;;  %s3727_s12 = sphi %s3766_s12, %s4444_s12  }
   0x4   : > { %p26_p0 = scmp.ge.s32.totalorder %s25_s17, 3  ;;  %p2840_p1 = scmp.ge.s32.totalorder %s3743_s16, 1 }
   0x5   : > { %p177_p2 = scmp.lt.s32.totalorder %s3743_s16, 7 }
   0x6   : > { %s4449_s17 = smov (%p26_p0, %s25_s17), 0  ;;  %s4451_s18 = smov (!%p26_p0, %s32_s18), %s3739_s15 }
   0x7   : > { %p178_p3 = pnand %p2840_p1, %p177_p2  ;;  %p34_p4 = scmp.ge.s32.totalorder %s4451_s18, 2 }
   0x8   : > { %p215_p5 = scmp.lt.s32.totalorder (!%p178_p3), %s3731_s13, 1  ;;  %s2842_s19 = sshll.u32 (!%p178_p3), %s3727_s12, 4 }
   0x9   : > { %s4453_s18 = smov (%p34_p4, %s4451_s18), 0  ;;  %181 = sbr.rel (%p178_p3) target bundleno = 393 (0x189), region = 32 }
   0xa   : > { %p230_p6 = scmp.lt.s32.totalorder (!%p178_p3), %s2842_s19, 47  ;;  %p240_p7 = scmp.ge.s32.totalorder (!%p178_p3), %s3727_s12, 1 }
   0xb   : > { %p241_p8 = scmp.lt.s32.totalorder (!%p178_p3), %s3727_s12, 2 }
   0xd   : > { %p3804_p9 = pnand (!%p178_p3), %p241_p8, %p240_p7 }
  0x10   : > { %s4455_s13 = smov (!%p215_p5, %s3731_s13), 1  ;;  %s4457_s19 = smov (!%p230_p6, %s2842_s19), 47 }
  0x11   : > { %s3662_s20 = smul.u32 384, %s4455_s13  ;;  %v2879_v0 = vld [vmem:[%s4432_s1 + $0x4] sm:$0xf] (!%p3804_p9)  ;;  %vm335_vm0 = vcmask (!%p3804_p9), 1043456   ;;  %v3821_v1 = vld [vmem:[%s4432_s1 + $0x10] sm:$0xf] (!%p3804_p9) }
  0x12   : > { %s3663_s21 = smul.u32 48, %s4455_s13  ;;  %s2844_s8 = sshll.u32 (!%p3804_p9), %s3727_s12, 7  ;;  %3298 = vmatprep.subr.msk.mxu1 (!%p3804_p9), %vm335_vm0, %v2879_v0  ;;  %3402 = vmatprep.subr.msk.mxu0 (!%p3804_p9), %vm335_vm0, %v3821_v1  ;;  %vm286_vm1 = vcmask (!%p3804_p9), 31744   ;;  %v265_v2 = vld [vmem:[%s4432_s1] sm:$0xf] (!%p3804_p9)  ;;  %vm2647_vm3 = vcmask (!%p3804_p9), 64512  }
  0x13   : > { %s219_s24 = scalar_lea.vmem %s4431_s0, %s3662_s20  ;;  %245 = sbr.rel (%p3804_p9) target bundleno = 384 (0x180), region = 36  ;;  %v3019_v3 = vld [vmem:[%s4432_s1 + $0x14] sm:$0xf] (!%p3804_p9)  ;;  %3299 = vmatpush3.msk.msra.mxu1 (!%p3804_p9), %vm335_vm0, %v2879_v0  ;;  %3403 = vmatpush3.msk.msra.mxu0 (!%p3804_p9), %vm335_vm0, %v3821_v1  ;;  %v3054_v9 = vld [vmem:[%s4432_s1 + $0x18] sm:$0xf] (!%p3804_p9) }
  0x14   : > { %s236_s26 = sadd.s32 %s3663_s21, %s4457_s19  ;;  %s3827_s9 = scalar_lea.vmem (!%p3804_p9), %s219_s24, %s2844_s8  ;;  %3324 = vmatprep.subr.msk.mxu1 (!%p3804_p9), %vm335_vm0, %v265_v2  ;;  %3428 = vmatprep.subr.msk.mxu0 (!%p3804_p9), %vm335_vm0, %v3019_v3  ;;  %v2931_v13 = vld [vmem:[%s4432_s1 + $0x8] sm:$0xf] (!%p3804_p9)  ;;  %v3917_v20 = vld [vmem:[%s4432_s1 + $0x1c] sm:$0xf] (!%p3804_p9)  ;;  %v2966_v37 = vld [vmem:[%s4432_s1 + $0xc] sm:$0xf] (!%p3804_p9) }
  0x15   : > { %s2843_s27 = sshll.u32 %s236_s26, 3  ;;  %v2863_v4 = vld [vmem:[%s3827_s9 - $0x10] sm:$0xff] (!%p3804_p9)  ;;  %v1145_v5 = vld [vmem:[%s3827_s9] sm:$0xff] (!%p3804_p9)  ;;  %v2864_v6 = vld [vmem:[%s3827_s9 - $0x8] sm:$0xff] (!%p3804_p9) }
  0x16   : > { %s3811_s30 = scalar_lea.vmem %s4434_s3, %s2843_s27  ;;  %3300 = vmatprep.mubr.msk.f32.mxu1 (!%p3804_p9), %vm286_vm1, %v2863_v4  ;;  %v1146_v7 = vld [vmem:[%s3827_s9 + $0x8] sm:$0xff] (!%p3804_p9)  ;;  %3404 = vmatprep.mubr.msk.f32.mxu0 (!%p3804_p9), %vm286_vm1, %v1145_v5  ;;  %v3847_v8 = vld [vmem:[%s3827_s9 + $0x10] sm:$0xff] (!%p3804_p9)  ;;  %v3857_v10 = vld [vmem:[%s3827_s9 + $0x18] sm:$0xff] (!%p3804_p9) }
  0x17   : > { %3301 = vmatmul.mubr.msk.f32.vlgmr.msra.gmra.mrb[0].mxu1 (!%p3804_p9), %vm286_vm1, %v2864_v6  ;;  %3405 = vmatmul.mubr.msk.f32.vlgmr.msra.gmra.mrb[0].mxu0 (!%p3804_p9), %vm286_vm1, %v1146_v7  ;;  %v3863_v11 = vld [vmem:[%s3827_s9 + $0x20] sm:$0xff] (!%p3804_p9)  ;;  %v3874_v12 = vld [vmem:[%s3827_s9 + $0x28] sm:$0xff] (!%p3804_p9)  ;;  %v3880_v14 = vld [vmem:[%s3827_s9 + $0x30] sm:$0xff] (!%p3804_p9) }
  0x18   : > { %3325 = vmatpush3.msk.msra.mxu1 (!%p3804_p9), %vm335_vm0, %v265_v2  ;;  %3429 = vmatpush3.msk.msra.mxu0 (!%p3804_p9), %vm335_vm0, %v3019_v3  ;;  %v3892_v15 = vld [vmem:[%s3827_s9 + $0x38] sm:$0xff] (!%p3804_p9)  ;;  %v3895_v16 = vld [vmem:[%s3827_s9 + $0x1] sm:$0xff] (!%p3804_p9)  ;;  %v3906_v17 = vld [vmem:[%s3827_s9 + $0x9] sm:$0xff] (!%p3804_p9) }
  0x19   : > { %3303 = vmatprep.mubr.msk.f32.mxu1 (!%p3804_p9), %vm286_vm1, %v1145_v5  ;;  %3407 = vmatprep.mubr.msk.f32.mxu0 (!%p3804_p9), %vm286_vm1, %v3847_v8  ;;  %v3909_v18 = vld [vmem:[%s3827_s9 + $0x40] sm:$0xff] (!%p3804_p9)  ;;  %v3912_v19 = vld [vmem:[%s3827_s9 + $0x11] sm:$0xff] (!%p3804_p9)  ;;  %v3927_v21 = vld [vmem:[%s3827_s9 + $0x48] sm:$0xff] (!%p3804_p9) }
  0x1a   : > { %3454 = vmatprep.subr.msk.mxu0 %vm335_vm0, %v3054_v9  ;;  %3350 = vmatprep.subr.msk.mxu1 %vm335_vm0, %v2931_v13  ;;  %v3930_v22 = vld [vmem:[%s3827_s9 + $0x19] sm:$0xff]  ;;  %v3935_v23 = vld [vmem:[%s3827_s9 + $0x50] sm:$0xff]  ;;  %v3938_v24 = vld [vmem:[%s3827_s9 + $0x21] sm:$0xff] }
  0x1b   : > { %3304 = vmatmul.mubr.msk.f32.gmra.mrb[2].mxu1 %vm286_vm1, %v1146_v7  ;;  %3408 = vmatmul.mubr.msk.f32.gmra.mrb[2].mxu0 %vm286_vm1, %v3857_v10  ;;  %v3951_v25 = vld [vmem:[%s3827_s9 + $0x58] sm:$0xff]  ;;  %v3954_v26 = vld [vmem:[%s3827_s9 + $0x29] sm:$0xff]  ;;  %v3957_v27 = vld [vmem:[%s3827_s9 + $0x60] sm:$0xff] }
  0x1c   : > { %3306 = vmatprep.mubr.msk.f32.mxu1 %vm286_vm1, %v3847_v8  ;;  %3410 = vmatprep.mubr.msk.f32.mxu0 %vm286_vm1, %v3863_v11  ;;  %v3960_v28 = vld [vmem:[%s3827_s9 + $0x31] sm:$0xff]  ;;  %v3971_v29 = vld [vmem:[%s3827_s9 + $0x68] sm:$0xff]  ;;  %v3974_v30 = vld [vmem:[%s3827_s9 + $0x39] sm:$0xff] }
  0x1d   : > { %v2846_v31 = vld [vmem:[%s3827_s9 - $0x11] sm:$0xff]  ;;  %v3978_v32 = vld [vmem:[%s3827_s9 + $0x41] sm:$0xff]  ;;  %v2847_v33 = vld [vmem:[%s3827_s9 - $0x9] sm:$0xff] }
  0x1e   : > { %v3989_v34 = vld [vmem:[%s3827_s9 + $0x49] sm:$0xff]  ;;  %v3992_v35 = vld [vmem:[%s3827_s9 - $0x1] sm:$0xff]  ;;  %v3995_v36 = vld [vmem:[%s3827_s9 + $0x51] sm:$0xff] }
  0x1f   : > { %3307 = vmatmul.mubr.msk.f32.gmra.mrb[4].mxu1 %vm286_vm1, %v3857_v10  ;;  %3411 = vmatmul.mubr.msk.f32.gmra.mrb[4].mxu0 %vm286_vm1, %v3874_v12  ;;  %v4007_v38 = vld [vmem:[%s3827_s9 + $0x7] sm:$0xff]  ;;  %v4010_v39 = vld [vmem:[%s3827_s9 + $0x59] sm:$0xff]  ;;  %v4015_v40 = vld [vmem:[%s3827_s9 + $0xf] sm:$0xff] }
  0x20   : > { %3309 = vmatprep.mubr.msk.f32.mxu1 %vm286_vm1, %v3863_v11  ;;  %3413 = vmatprep.mubr.msk.f32.mxu0 %vm286_vm1, %v3880_v14  ;;  %v4018_v41 = vld [vmem:[%s3827_s9 + $0x61] sm:$0xff]  ;;  %v4030_v42 = vld [vmem:[%s3827_s9 + $0x17] sm:$0xff]  ;;  %v4033_v43 = vld [vmem:[%s3827_s9 + $0x69] sm:$0xff] }
  0x21   : > { %v4036_v44 = vld [vmem:[%s3827_s9 + $0x1f] sm:$0xff]  ;;  %v4039_v45 = vld [vmem:[%s3827_s9 + $0x71] sm:$0xff]  ;;  %v4050_v46 = vld [vmem:[%s3827_s9 + $0x27] sm:$0xff] }
  0x22   : > { %v4053_v47 = vld [vmem:[%s3827_s9 + $0x79] sm:$0xff]  ;;  %v4056_v48 = vld [vmem:[%s3827_s9 + $0x2f] sm:$0xff]  ;;  %v4084_v52 = vld [vmem:[%s3827_s9 + $0x47] sm:$0xff] }
  0x23   : > { %3310 = vmatmul.mubr.msk.f32.gmra.mrb[6].mxu1 %vm286_vm1, %v3874_v12  ;;  %3414 = vmatmul.mubr.msk.f32.gmra.mrb[6].mxu0 %vm286_vm1, %v3892_v15  ;;  %v4067_v49 = vld [vmem:[%s3827_s9 + $0x37] sm:$0xff]  ;;  %v4070_v50 = vld [vmem:[%s3827_s9 + $0x3f] sm:$0xff]  ;;  %v4089_v53 = vld [vmem:[%s3827_s9 + $0x4f] sm:$0xff] }
  0x24   : > { %3312 = vmatprep.mubr.msk.f32.mxu1 %vm286_vm1, %v3880_v14  ;;  %3430 = vmatprep.mubr.msk.f32.mxu0 %vm286_vm1, %v3895_v16  ;;  %v3124_v51 = vld [vmem:[%s4432_s1 + $0x20] sm:$0xf]  ;;  %v4101_v54 = vld [vmem:[%s3827_s9 + $0x57] sm:$0xff]  ;;  %v4115_v56 = vld [vmem:[%s3827_s9 + $0x67] sm:$0xff] }
  0x25   : > { %v4104_v55 = vld [vmem:[%s3827_s9 + $0x5f] sm:$0xff]  ;;  %v2915_v57 = vld [vmem:[%s3827_s9 - $0xf] sm:$0xff]  ;;  %v3053_v62 = vld [vmem:[%s3827_s9 + $0x87] sm:$0xff] }
  0x26   : > { %v2916_v58 = vld [vmem:[%s3827_s9 - $0x7] sm:$0xff]  ;;  %v4135_v59 = vld [vmem:[%s3827_s9 + $0x6f] sm:$0xff]  ;;  %v3122_v3 = vld [vmem:[%s3827_s9 + $0x81] sm:$0xff] }
  0x27   : > { %3313 = vmatmul.mubr.msk.f32.gmra.mrb[8].mxu1 %vm286_vm1, %v3892_v15  ;;  %3431 = vmatmul.mubr.msk.f32.vlgmr.msra.gmra.mrb[0].mxu0 %vm286_vm1, %v3906_v17  ;;  %v3051_v60 = vld [vmem:[%s3827_s9 + $0x77] sm:$0xff]  ;;  %v3052_v61 = vld [vmem:[%s3827_s9 + $0x7f] sm:$0xff]  ;;  %v3088_v2 = vld [vmem:[%s3827_s9 + $0x88] sm:$0xff] }
  0x28   : > { %3455 = vmatpush3.msk.msra.mxu0 %vm335_vm0, %v3054_v9  ;;  %3315 = vmatprep.mubr.msk.f32.mxu1 %vm286_vm1, %v3909_v18  ;;  %v3085_v63 = vld [vmem:[%s3827_s9 + $0x70] sm:$0xff]  ;;  %v3086_v0 = vld [vmem:[%s3827_s9 + $0x78] sm:$0xff] }
  0x29   : > { %3433 = vmatprep.mubr.msk.f32.mxu0 %vm286_vm1, %v3912_v19  ;;  %3480 = vmatprep.subr.msk.mxu0 %vm335_vm0, %v3917_v20  ;;  %v3123_v4 = vld [vmem:[%s3827_s9 + $0x89] sm:$0xff] }
  0x2b   : > { %3316 = vmatmul.mubr.msk.f32.gmra.mrb[10].mxu1 %vm286_vm1, %v3927_v21  ;;  %3434 = vmatmul.mubr.msk.f32.gmra.mrb[2].mxu0 %vm286_vm1, %v3930_v22 }
  0x2c   : > { %3318 = vmatprep.mubr.msk.f32.mxu1 %vm286_vm1, %v3935_v23  ;;  %3436 = vmatprep.mubr.msk.f32.mxu0 %vm286_vm1, %v3938_v24 }
  0x2f   : > { %3319 = vmatmul.mubr.msk.f32.gmra.mrb[12].mxu1 %vm286_vm1, %v3951_v25  ;;  %3437 = vmatmul.mubr.msk.f32.gmra.mrb[4].mxu0 %vm286_vm1, %v3954_v26 }
  0x30   : > { %3321 = vmatprep.mubr.msk.f32.mxu1 %vm286_vm1, %v3957_v27  ;;  %3439 = vmatprep.mubr.msk.f32.mxu0 %vm286_vm1, %v3960_v28 }
  0x33   : > { %3322 = vmatmul.mubr.msk.f32.gmra.mrb[14].mxu1 %vm286_vm1, %v3971_v29  ;;  %3440 = vmatmul.mubr.msk.f32.gmra.mrb[6].mxu0 %vm286_vm1, %v3974_v30 }
  0x34   : > { %3326 = vmatprep.mubr.msk.f32.mxu1 %vm286_vm1, %v2846_v31  ;;  %3442 = vmatprep.mubr.msk.f32.mxu0 %vm286_vm1, %v3978_v32 }
  0x37   : > { %3327 = vmatmul.mubr.msk.f32.vlgmr.msra.gmra.mrb[0].mxu1 %vm286_vm1, %v2847_v33  ;;  %3443 = vmatmul.mubr.msk.f32.gmra.mrb[8].mxu0 %vm286_vm1, %v3989_v34 }
  0x38   : > { %3351 = vmatpush3.msk.msra.mxu1 %vm335_vm0, %v2931_v13  ;;  %3329 = vmatprep.mubr.msk.f32.mxu1 %vm286_vm1, %v3992_v35 }
  0x39   : > { %3445 = vmatprep.mubr.msk.f32.mxu0 %vm286_vm1, %v3995_v36  ;;  %3376 = vmatprep.subr.msk.mxu1 %vm335_vm0, %v2966_v37 }
  0x3b   : > { %3330 = vmatmul.mubr.msk.f32.gmra.mrb[2].mxu1 %vm286_vm1, %v4007_v38  ;;  %3446 = vmatmul.mubr.msk.f32.gmra.mrb[10].mxu0 %vm286_vm1, %v4010_v39 }
  0x3c   : > { %3332 = vmatprep.mubr.msk.f32.mxu1 %vm286_vm1, %v4015_v40  ;;  %3448 = vmatprep.mubr.msk.f32.mxu0 %vm286_vm1, %v4018_v41 }
  0x3f   : > { %3333 = vmatmul.mubr.msk.f32.gmra.mrb[4].mxu1 %vm286_vm1, %v4030_v42  ;;  %3449 = vmatmul.mubr.msk.f32.gmra.mrb[12].mxu0 %vm286_vm1, %v4033_v43 }
  0x40   : > { %3335 = vmatprep.mubr.msk.f32.mxu1 %vm286_vm1, %v4036_v44  ;;  %3451 = vmatprep.mubr.msk.f32.mxu0 %vm286_vm1, %v4039_v45 }
  0x43   : > { %3336 = vmatmul.mubr.msk.f32.gmra.mrb[6].mxu1 %vm286_vm1, %v4050_v46  ;;  %3452 = vmatmul.mubr.msk.f32.gmra.mrb[14].mxu0 %vm286_vm1, %v4053_v47 }
  0x44   : > { %3338 = vmatprep.mubr.msk.f32.mxu1 %vm286_vm1, %v4056_v48  ;;  %3456 = vmatprep.mubr.msk.f32.mxu0 %vm286_vm1, %v4015_v40 }
  0x47   : > { %3339 = vmatmul.mubr.msk.f32.gmra.mrb[8].mxu1 %vm286_vm1, %v4067_v49  ;;  %3457 = vmatmul.mubr.msk.f32.vlgmr.msra.gmra.mrb[0].mxu0 %vm286_vm1, %v4030_v42 }
  0x48   : > { %3481 = vmatpush3.msk.msra.mxu0 %vm335_vm0, %v3917_v20  ;;  %3341 = vmatprep.mubr.msk.f32.mxu1 %vm286_vm1, %v4070_v50 }
  0x49   : > { %3459 = vmatprep.mubr.msk.f32.mxu0 %vm286_vm1, %v4036_v44  ;;  %3506 = vmatprep.subr.msk.mxu0 %vm335_vm0, %v3124_v51 }
  0x4b   : > { %3342 = vmatmul.mubr.msk.f32.gmra.mrb[10].mxu1 %vm286_vm1, %v4084_v52  ;;  %3460 = vmatmul.mubr.msk.f32.gmra.mrb[2].mxu0 %vm286_vm1, %v4050_v46 }
  0x4c   : > { %3344 = vmatprep.mubr.msk.f32.mxu1 %vm286_vm1, %v4089_v53  ;;  %3462 = vmatprep.mubr.msk.f32.mxu0 %vm286_vm1, %v4056_v48 }
  0x4f   : > { %3345 = vmatmul.mubr.msk.f32.gmra.mrb[12].mxu1 %vm286_vm1, %v4101_v54  ;;  %3463 = vmatmul.mubr.msk.f32.gmra.mrb[4].mxu0 %vm286_vm1, %v4067_v49 }
  0x50   : > { %3347 = vmatprep.mubr.msk.f32.mxu1 %vm286_vm1, %v4104_v55  ;;  %3465 = vmatprep.mubr.msk.f32.mxu0 %vm286_vm1, %v4070_v50 }
  0x53   : > { %3348 = vmatmul.mubr.msk.f32.gmra.mrb[14].mxu1 %vm286_vm1, %v4115_v56  ;;  %3466 = vmatmul.mubr.msk.f32.gmra.mrb[6].mxu0 %vm286_vm1, %v4084_v52 }
  0x54   : > { %3352 = vmatprep.mubr.msk.f32.mxu1 %vm286_vm1, %v2915_v57  ;;  %3468 = vmatprep.mubr.msk.f32.mxu0 %vm286_vm1, %v4089_v53 }
  0x57   : > { %3353 = vmatmul.mubr.msk.f32.vlgmr.msra.gmra.mrb[0].mxu1 %vm286_vm1, %v2916_v58  ;;  %3469 = vmatmul.mubr.msk.f32.gmra.mrb[8].mxu0 %vm286_vm1, %v4101_v54 }
  0x58   : > { %3377 = vmatpush3.msk.msra.mxu1 %vm335_vm0, %v2966_v37  ;;  %3355 = vmatprep.mubr.msk.f32.mxu1 %vm286_vm1, %v3895_v16 }
  0x59   : > { %3471 = vmatprep.mubr.msk.f32.mxu0 %vm286_vm1, %v4104_v55  ;;  %3532 = vmatprep.subr.msk.mxu1 %vm335_vm0, %v3821_v1 }
  0x5b   : > { %3356 = vmatmul.mubr.msk.f32.gmra.mrb[2].mxu1 %vm286_vm1, %v3906_v17  ;;  %3472 = vmatmul.mubr.msk.f32.gmra.mrb[10].mxu0 %vm286_vm1, %v4115_v56  ;;  %v4293_v17 = vld [vmem:[%s4433_s2] ss:$0 sm:$0xff] }
  0x5c   : > { %3358 = vmatprep.mubr.msk.f32.mxu1 %vm286_vm1, %v3912_v19  ;;  %3474 = vmatprep.mubr.msk.f32.mxu0 %vm286_vm1, %v4135_v59 }
  0x5f   : > { %3359 = vmatmul.mubr.msk.f32.gmra.mrb[4].mxu1 %vm286_vm1, %v3930_v22  ;;  %3475 = vmatmul.mubr.msk.f32.gmra.mrb[12].mxu0 %vm286_vm1, %v3051_v60 }
  0x60   : > { %3361 = vmatprep.mubr.msk.f32.mxu1 %vm286_vm1, %v3938_v24  ;;  %3477 = vmatprep.mubr.msk.f32.mxu0 %vm286_vm1, %v3052_v61 }
  0x63   : > { %3362 = vmatmul.mubr.msk.f32.gmra.mrb[6].mxu1 %vm286_vm1, %v3954_v26  ;;  %3478 = vmatmul.mubr.msk.f32.gmra.mrb[14].mxu0 %vm286_vm1, %v3053_v62 }
  0x64   : > { %3364 = vmatprep.mubr.msk.f32.mxu1 %vm286_vm1, %v3960_v28  ;;  %3482 = vmatprep.mubr.msk.f32.mxu0 %vm286_vm1, %v3847_v8  ;;  %v2342_v8 = vlaneseq }
  0x67   : > { %3365 = vmatmul.mubr.msk.f32.gmra.mrb[8].mxu1 %vm286_vm1, %v3974_v30  ;;  %3483 = vmatmul.mubr.msk.f32.vlgmr.msra.gmra.mrb[0].mxu0 %vm286_vm1, %v3857_v10 }
  0x68   : > { %3507 = vmatpush3.msk.msra.mxu0 %vm335_vm0, %v3124_v51  ;;  %3367 = vmatprep.mubr.msk.f32.mxu1 %vm286_vm1, %v3978_v32 }
  0x69   : > { %3485 = vmatprep.mubr.msk.f32.mxu0 %vm286_vm1, %v3863_v11  ;;  %v4287_v11 = vshrl.u32 %v2342_v8, 7 }
  0x6b   : > { %3368 = vmatmul.mubr.msk.f32.gmra.mrb[10].mxu1 %vm286_vm1, %v3989_v34  ;;  %3486 = vmatmul.mubr.msk.f32.gmra.mrb[2].mxu0 %vm286_vm1, %v3874_v12 }
  0x6c   : > { %3370 = vmatprep.mubr.msk.f32.mxu1 %vm286_vm1, %v3995_v36  ;;  %3488 = vmatprep.mubr.msk.f32.mxu0 %vm286_vm1, %v3880_v14  ;;  %v2344_v14 = vadd.s32 8, %v4287_v11 }
  0x6f   : > { %3371 = vmatmul.mubr.msk.f32.gmra.mrb[12].mxu1 %vm286_vm1, %v4010_v39  ;;  %3489 = vmatmul.mubr.msk.f32.gmra.mrb[4].mxu0 %vm286_vm1, %v3892_v15 }
  0x70   : > { %3373 = vmatprep.mubr.msk.f32.mxu1 %vm286_vm1, %v4018_v41  ;;  %3491 = vmatprep.mubr.msk.f32.mxu0 %vm286_vm1, %v3909_v18 }
  0x73   : > { %3374 = vmatmul.mubr.msk.f32.gmra.mrb[14].mxu1 %vm286_vm1, %v4033_v43  ;;  %3492 = vmatmul.mubr.msk.f32.gmra.mrb[6].mxu0 %vm286_vm1, %v3927_v21 }
  0x74   : > { %3378 = vmatprep.mubr.msk.f32.mxu1 %vm286_vm1, %v3992_v35  ;;  %3494 = vmatprep.mubr.msk.f32.mxu0 %vm286_vm1, %v3935_v23 }
  0x77   : > { %3379 = vmatmul.mubr.msk.f32.vlgmr.msra.gmra.mrb[0].mxu1 %vm286_vm1, %v4007_v38  ;;  %3495 = vmatmul.mubr.msk.f32.gmra.mrb[8].mxu0 %vm286_vm1, %v3951_v25 }
  0x78   : > { %3533 = vmatpush3.msk.msra.mxu1 %vm335_vm0, %v3821_v1  ;;  %3381 = vmatprep.mubr.msk.f32.mxu1 %vm286_vm1, %v4015_v40  ;;  %v3087_v1 = vld [vmem:[%s3827_s9 + $0x80] sm:$0xff] }
  0x79   : > { %3497 = vmatprep.mubr.msk.f32.mxu0 %vm286_vm1, %v3957_v27 }
  0x7b   : > { %3382 = vmatmul.mubr.msk.f32.gmra.mrb[2].mxu1 %vm286_vm1, %v4030_v42  ;;  %3498 = vmatmul.mubr.msk.f32.gmra.mrb[10].mxu0 %vm286_vm1, %v3971_v29 }
  0x7c   : > { %3384 = vmatprep.mubr.msk.f32.mxu1 %vm286_vm1, %v4036_v44  ;;  %3500 = vmatprep.mubr.msk.f32.mxu0 %vm286_vm1, %v3085_v63  ;;  %v2350_v44 = vadd.s32 56, %v4287_v11 }
  0x7e   : > { %v2412_v58 = vand.u32 15, %v2350_v44 }
  0x7f   : > { %3385 = vmatmul.mubr.msk.f32.gmra.mrb[4].mxu1 %vm286_vm1, %v4050_v46  ;;  %3501 = vmatmul.mubr.msk.f32.gmra.mrb[12].mxu0 %vm286_vm1, %v3086_v0 }
  0x80   : > { %3387 = vmatprep.mubr.msk.f32.mxu1 %vm286_vm1, %v4056_v48  ;;  %3503 = vmatprep.mubr.msk.f32.mxu0 %vm286_vm1, %v3087_v1  ;;  %v2349_v48 = vadd.s32 48, %v4287_v11  ;;  %vm2574_vm9 = vcmp.le.s32.totalorder %v2412_v58, 8 }
  0x83   : > { %3388 = vmatmul.mubr.msk.f32.gmra.mrb[6].mxu1 %vm286_vm1, %v4067_v49  ;;  %3504 = vmatmul.mubr.msk.f32.gmra.mrb[14].mxu0 %vm286_vm1, %v3088_v2 }
  0x84   : > { %3390 = vmatprep.mubr.msk.f32.mxu1 %vm286_vm1, %v4070_v50  ;;  %3508 = vmatprep.mubr.msk.f32.mxu0 %vm286_vm1, %v3912_v19  ;;  %v2346_v19 = vadd.s32 24, %v4287_v11 }
  0x87   : > { %3391 = vmatmul.mubr.msk.f32.gmra.mrb[8].mxu1 %vm286_vm1, %v4084_v52  ;;  %3509 = vmatmul.mubr.msk.f32.vlgmr.msra.gmra.mrb[0].mxu0 %vm286_vm1, %v3930_v22  ;;  %v2363_v22 = vand.u32 15, %v4287_v11 }
  0x88   : > { %3393 = vmatprep.mubr.msk.f32.mxu1 %vm286_vm1, %v4089_v53  ;;  %3511 = vmatprep.mubr.msk.f32.mxu0 %vm286_vm1, %v3938_v24 }
  0x89   : > { %vm2551_vm4 = vcmp.ge.s32.totalorder %v2363_v22, 1 }
  0x8b   : > { %3394 = vmatmul.mubr.msk.f32.gmra.mrb[10].mxu1 %vm286_vm1, %v4101_v54  ;;  %3512 = vmatmul.mubr.msk.f32.gmra.mrb[2].mxu0 %vm286_vm1, %v3954_v26  ;;  %v2348_v26 = vadd.s32 40, %v4287_v11 }
  0x8c   : > { %3396 = vmatprep.mubr.msk.f32.mxu1 %vm286_vm1, %v4104_v55  ;;  %3514 = vmatprep.mubr.msk.f32.mxu0 %vm286_vm1, %v3960_v28 }
  0x8f   : > { %3397 = vmatmul.mubr.msk.f32.gmra.mrb[12].mxu1 %vm286_vm1, %v4115_v56  ;;  %3515 = vmatmul.mubr.msk.f32.gmra.mrb[4].mxu0 %vm286_vm1, %v3974_v30  ;;  %v2384_v30 = vand.u32 15, %v2346_v19 }
  0x90   : > { %3399 = vmatprep.mubr.msk.f32.mxu1 %vm286_vm1, %v4135_v59  ;;  %3517 = vmatprep.mubr.msk.f32.mxu0 %vm286_vm1, %v3978_v32  ;;  %v2352_v59 = vadd.s32 72, %v4287_v11 }
  0x91   : > { %vm2570_vm5 = vcmp.le.s32.totalorder %v2384_v30, 8 }
  0x93   : > { %3400 = vmatmul.mubr.msk.f32.gmra.mrb[14].mxu1 %vm286_vm1, %v3051_v60  ;;  %3518 = vmatmul.mubr.msk.f32.gmra.mrb[6].mxu0 %vm286_vm1, %v3989_v34 }
  0x94   : > { %3416 = vmatprep.mubr.msk.f32.mxu1 %vm286_vm1, %v3909_v18  ;;  %3520 = vmatprep.mubr.msk.f32.mxu0 %vm286_vm1, %v3995_v36  ;;  %v2370_v18 = vand.u32 15, %v2344_v14 }
  0x96   : > { %vm2568_vm2 = vcmp.le.s32.totalorder %v2370_v18, 8 }
  0x97   : > { %3417 = vmatmul.mubr.msk.f32.vlgmr.msra.gmra.mrb[8].mxu1 %vm286_vm1, %v3927_v21  ;;  %3521 = vmatmul.mubr.msk.f32.gmra.mrb[8].mxu0 %vm286_vm1, %v4010_v39  ;;  %v2398_v39 = vand.u32 15, %v2348_v26 }
  0x98   : > { %3419 = vmatprep.mubr.msk.f32.mxu1 %vm286_vm1, %v3935_v23  ;;  %3523 = vmatprep.mubr.msk.f32.mxu0 %vm286_vm1, %v4018_v41  ;;  %v2345_v23 = vadd.s32 16, %v4287_v11 }
  0x99   : > { %vm4311_vm7 = vcmp.le.s32.totalorder %v2398_v39, 8 }
  0x9a   : > { %v2377_v34 = vand.u32 15, %v2345_v23 }
  0x9b   : > { %3420 = vmatmul.mubr.msk.f32.gmra.mrb[10].mxu1 %vm286_vm1, %v3951_v25  ;;  %3524 = vmatmul.mubr.msk.f32.gmra.mrb[10].mxu0 %vm286_vm1, %v4033_v43 }
  0x9c   : > { %3422 = vmatprep.mubr.msk.f32.mxu1 %vm286_vm1, %v3957_v27  ;;  %3526 = vmatprep.mubr.msk.f32.mxu0 %vm286_vm1, %v4039_v45  ;;  %v2347_v27 = vadd.s32 32, %v4287_v11  ;;  %vm2553_vm6 = vcmp.ge.s32.totalorder %v2377_v34, 1  ;;  %v2355_v34 = vadd.s32 96, %v4287_v11 }
  0x9e   : > { %v2391_v40 = vand.u32 15, %v2347_v27 }
  0x9f   : > { %3423 = vmatmul.mubr.msk.f32.gmra.mrb[12].mxu1 %vm286_vm1, %v3971_v29  ;;  %3527 = vmatmul.mubr.msk.f32.gmra.mrb[12].mxu0 %vm286_vm1, %v4053_v47 }
  0xa0   : > { %3425 = vmatprep.mubr.msk.f32.mxu1 %vm286_vm1, %v3085_v63  ;;  %3529 = vmatprep.mubr.msk.f32.mxu0 %vm286_vm1, %v3122_v3  ;;  %vm4315_vm8 = vcmp.ge.s32.totalorder %v2391_v40, 1  ;;  %v2405_v63 = vand.u32 15, %v2349_v48 }
  0xa2   : > { %vm2557_vm10 = vcmp.ge.s32.totalorder %v2405_v63, 1 }
  0xa3   : > { %3426 = vmatmul.mubr.msk.f32.gmra.mrb[14].mxu1 %vm286_vm1, %v3086_v0  ;;  %3530 = vmatmul.mubr.msk.f32.gmra.mrb[14].mxu0 %vm286_vm1, %v3123_v4  ;;  %v2351_v0 = vadd.s32 64, %v4287_v11 }
  0xa5   : > { %v2419_v18 = vand.u32 15, %v2351_v0 }
  0xa7   : > { %vm2559_vm12 = vcmp.ge.s32.totalorder %v2419_v18, 1 }
 0x14a   : > { %v3380_v5 = vpop.f32.mrb[0].mxu1 }
 0x14b   : > { %v1049_v6 = vpop.f32.mrb[1].mxu1 }
 0x14e   : > { %v3383_v7 = vpop.f32.mrb[2].mxu1 }
 0x14f   : > { %v1059_v9 = vpop.f32.mrb[3].mxu1 }
 0x152   : > { %v3386_v10 = vpop.f32.mrb[4].mxu1 }
 0x153   : > { %v1069_v12 = vpop.f32.mrb[5].mxu1 }
 0x156   : > { %v3389_v13 = vpop.f32.mrb[6].mxu1 }
 0x157   : > { %v1079_v15 = vpop.f32.mrb[7].mxu1 }
 0x15a   : > { %v3510_v16 = vpop.f32.mrb[0].mxu0 }
 0x15b   : > { %v3534_v20 = vadd.f32 %v3510_v16, %v3380_v5  ;;  %v2208_v21 = vpop.f32.mrb[1].mxu0  ;;  %v2354_v5 = vadd.s32 88, %v4287_v11 }
 0x15c   : > { %v3535_v24 = vadd.f32 %v2208_v21, %v1049_v6  ;;  %v2353_v6 = vadd.s32 80, %v4287_v11 }
 0x15d   : > { %v2311_v25 = vadd.f32 %v3534_v20, %v4293_v17  ;;  %v2440_v23 = vand.u32 15, %v2354_v5 }
 0x15e   : > { %v2310_v28 = vadd.f32 %v3535_v24, %v4293_v17  ;;  %v3513_v29 = vpop.f32.mrb[2].mxu0  ;;  %v2433_v24 = vand.u32 15, %v2353_v6 }
 0x15f   : > { %v2327_v31 = vmax.f32 %v2311_v25, 0.0  ;;  %v3536_v32 = vadd.f32 %v3513_v29, %v3383_v7  ;;  %v2218_v33 = vpop.f32.mrb[3].mxu0  ;;  %v2356_v29 = vadd.s32 104, %v4287_v11  ;;  %vm4347_vm13 = vcmp.le.s32.totalorder %v2440_v23, 8 }
 0x160   : > { %v2326_v35 = vmax.f32 %v2310_v28, 0.0  ;;  %v3537_v36 = vadd.f32 %v2218_v33, %v1059_v9  ;;  %vm4351_vm14 = vcmp.ge.s32.totalorder %v2433_v24, 1 }
 0x161   : > { %v2632_v37 = vsel %vm2568_vm2, %v2327_v31, 0.0  ;;  %v2313_v38 = vadd.f32 %v3536_v32, %v4293_v17 }
 0x162   : > { %2649 = vst.msk [vmem:[%s3811_s30 + $0x8] sm:$0xff] %vm2647_vm3, %v2632_v37  ;;  %v2631_v41 = vsel %vm2551_vm4, %v2326_v35, 0.0  ;;  %v2312_v42 = vadd.f32 %v3537_v36, %v4293_v17  ;;  %v3516_v43 = vpop.f32.mrb[4].mxu0 }
 0x163   : > { %2648 = vst.msk [vmem:[%s3811_s30] sm:$0xff] %vm2647_vm3, %v2631_v41  ;;  %v2329_v45 = vmax.f32 %v2313_v38, 0.0  ;;  %v3538_v46 = vadd.f32 %v3516_v43, %v3386_v10  ;;  %v2228_v47 = vpop.f32.mrb[5].mxu0 }
 0x164   : > { %v2328_v49 = vmax.f32 %v2312_v42, 0.0  ;;  %v3539_v50 = vadd.f32 %v2228_v47, %v1069_v12  ;;  %v2426_v12 = vand.u32 15, %v2352_v59 }
 0x165   : > { %v2634_v51 = vsel %vm2570_vm5, %v2329_v45, 0.0  ;;  %v2315_v52 = vadd.f32 %v3538_v46, %v4293_v17  ;;  %v2454_v45 = vand.u32 15, %v2356_v29  ;;  %v2358_v46 = vadd.s32 120, %v4287_v11 }
 0x166   : > { %2651 = vst.msk [vmem:[%s3811_s30 + $0x18] sm:$0xff] %vm2647_vm3, %v2634_v51  ;;  %v2633_v55 = vsel %vm2553_vm6, %v2328_v49, 0.0  ;;  %v2314_v56 = vadd.f32 %v3539_v50, %v4293_v17  ;;  %v3519_v57 = vpop.f32.mrb[6].mxu0  ;;  %vm2576_vm11 = vcmp.le.s32.totalorder %v2426_v12, 8  ;;  %v2447_v51 = vand.u32 15, %v2355_v34 }
 0x167   : > { %2650 = vst.msk [vmem:[%s3811_s30 + $0x10] sm:$0xff] %vm2647_vm3, %v2633_v55  ;;  %v2331_v60 = vmax.f32 %v2315_v52, 0.0  ;;  %v3540_v61 = vadd.f32 %v3519_v57, %v3389_v13  ;;  %v2238_v62 = vpop.f32.mrb[7].mxu0  ;;  %v2357_v52 = vadd.s32 112, %v4287_v11  ;;  %vm2580_vm15 = vcmp.le.s32.totalorder %v2454_v45, 8 }
 0x168   : > { %v2330_v1 = vmax.f32 %v2314_v56, 0.0  ;;  %v3541_v2 = vadd.f32 %v2238_v62, %v1079_v15  ;;  %vm2563_vm0 = vcmp.ge.s32.totalorder %v2447_v51, 1 }
 0x169   : > { %v2636_v3 = vsel %vm4311_vm7, %v2331_v60, 0.0  ;;  %v2317_v4 = vadd.f32 %v3540_v61, %v4293_v17  ;;  %v2468_v61 = vand.u32 15, %v2358_v46 }
 0x16a   : > { %2653 = vst.msk [vmem:[%s3811_s30 + $0x28] sm:$0xff] %vm2647_vm3, %v2636_v3  ;;  %v2635_v7 = vsel %vm4315_vm8, %v2330_v1, 0.0  ;;  %v2316_v8 = vadd.f32 %v3541_v2, %v4293_v17  ;;  %v3418_v9 = vpop.f32.mrb[8].mxu1  ;;  %v3522_v10 = vpop.f32.mrb[8].mxu0  ;;  %v2461_v1 = vand.u32 15, %v2357_v52 }
 0x16b   : > { %2652 = vst.msk [vmem:[%s3811_s30 + $0x20] sm:$0xff] %vm2647_vm3, %v2635_v7  ;;  %v2333_v13 = vmax.f32 %v2317_v4, 0.0  ;;  %v3542_v14 = vadd.f32 %v3522_v10, %v3418_v9  ;;  %v1320_v15 = vpop.f32.mrb[9].mxu1  ;;  %v2248_v16 = vpop.f32.mrb[9].mxu0  ;;  %vm2582_vm1 = vcmp.le.s32.totalorder %v2468_v61, 8 }
 0x16c   : > { %v2332_v19 = vmax.f32 %v2316_v8, 0.0  ;;  %v3543_v20 = vadd.f32 %v2248_v16, %v1320_v15  ;;  %vm2565_vm2 = vcmp.ge.s32.totalorder %v2461_v1, 1 }
 0x16d   : > { %v2638_v21 = vsel %vm2574_vm9, %v2333_v13, 0.0  ;;  %v2319_v22 = vadd.f32 %v3542_v14, %v4293_v17 }
 0x16e   : > { %2655 = vst.msk [vmem:[%s3811_s30 + $0x38] sm:$0xff] %vm2647_vm3, %v2638_v21  ;;  %v2637_v25 = vsel %vm2557_vm10, %v2332_v19, 0.0  ;;  %v2318_v26 = vadd.f32 %v3543_v20, %v4293_v17  ;;  %v3421_v27 = vpop.f32.mrb[10].mxu1  ;;  %v3525_v28 = vpop.f32.mrb[10].mxu0 }
 0x16f   : > { %2654 = vst.msk [vmem:[%s3811_s30 + $0x30] sm:$0xff] %vm2647_vm3, %v2637_v25  ;;  %v2335_v30 = vmax.f32 %v2319_v22, 0.0  ;;  %v3544_v31 = vadd.f32 %v3525_v28, %v3421_v27  ;;  %v1330_v32 = vpop.f32.mrb[11].mxu1  ;;  %v2258_v33 = vpop.f32.mrb[11].mxu0 }
 0x170   : > { %v2334_v35 = vmax.f32 %v2318_v26, 0.0  ;;  %v3545_v36 = vadd.f32 %v2258_v33, %v1330_v32 }
 0x171   : > { %v2640_v37 = vsel %vm2576_vm11, %v2335_v30, 0.0  ;;  %v2321_v38 = vadd.f32 %v3544_v31, %v4293_v17 }
 0x172   : > { %2657 = vst.msk [vmem:[%s3811_s30 + $0x48] sm:$0xff] %vm2647_vm3, %v2640_v37  ;;  %v2639_v41 = vsel %vm2559_vm12, %v2334_v35, 0.0  ;;  %v2320_v42 = vadd.f32 %v3545_v36, %v4293_v17  ;;  %v3424_v43 = vpop.f32.mrb[12].mxu1  ;;  %v3528_v44 = vpop.f32.mrb[12].mxu0 }
 0x173   : > { %2656 = vst.msk [vmem:[%s3811_s30 + $0x40] sm:$0xff] %vm2647_vm3, %v2639_v41  ;;  %v2337_v47 = vmax.f32 %v2321_v38, 0.0  ;;  %v3546_v48 = vadd.f32 %v3528_v44, %v3424_v43  ;;  %v1340_v49 = vpop.f32.mrb[13].mxu1  ;;  %v2268_v50 = vpop.f32.mrb[13].mxu0 }
 0x174   : > { %v2336_v53 = vmax.f32 %v2320_v42, 0.0  ;;  %v3547_v54 = vadd.f32 %v2268_v50, %v1340_v49 }
 0x175   : > { %v2642_v55 = vsel %vm4347_vm13, %v2337_v47, 0.0  ;;  %v2323_v56 = vadd.f32 %v3546_v48, %v4293_v17 }
 0x176   : > { %2659 = vst.msk [vmem:[%s3811_s30 + $0x58] sm:$0xff] %vm2647_vm3, %v2642_v55  ;;  %v2641_v57 = vsel %vm4351_vm14, %v2336_v53, 0.0  ;;  %v2322_v58 = vadd.f32 %v3547_v54, %v4293_v17  ;;  %v3427_v59 = vpop.f32.mrb[14].mxu1  ;;  %v3531_v60 = vpop.f32.mrb[14].mxu0 }
 0x177   : > { %2658 = vst.msk [vmem:[%s3811_s30 + $0x50] sm:$0xff] %vm2647_vm3, %v2641_v57  ;;  %v2339_v11 = vmax.f32 %v2323_v56, 0.0  ;;  %v3548_v62 = vadd.f32 %v3531_v60, %v3427_v59  ;;  %v1350_v63 = vpop.f32.mrb[15].mxu1  ;;  %v2278_v0 = vpop.f32.mrb[15].mxu0 }
 0x178   : > { %v2338_v2 = vmax.f32 %v2322_v58, 0.0  ;;  %v3549_v3 = vadd.f32 %v2278_v0, %v1350_v63 }
 0x179   : > { %v2644_v4 = vsel %vm2580_vm15, %v2339_v11, 0.0  ;;  %v2325_v5 = vadd.f32 %v3548_v62, %v4293_v17 }
 0x17a   : > { %2661 = vst.msk [vmem:[%s3811_s30 + $0x68] sm:$0xff] %vm2647_vm3, %v2644_v4  ;;  %v2643_v6 = vsel %vm2563_vm0, %v2338_v2, 0.0  ;;  %v2324_v7 = vadd.f32 %v3549_v3, %v4293_v17 }
 0x17b   : > { %2660 = vst.msk [vmem:[%s3811_s30 + $0x60] sm:$0xff] %vm2647_vm3, %v2643_v6  ;;  %v2341_v8 = vmax.f32 %v2325_v5, 0.0 }
 0x17c   : > { %v2340_v9 = vmax.f32 %v2324_v7, 0.0 }
 0x17d   : > { %v2646_v10 = vsel %vm2582_vm1, %v2341_v8, 0.0 }
 0x17e   : > { %2663 = vst.msk [vmem:[%s3811_s30 + $0x78] sm:$0xff] %vm2647_vm3, %v2646_v10  ;;  %v2645_v12 = vsel %vm2565_vm2, %v2340_v9, 0.0 }
 0x17f   : > { %2662 = vst.msk [vmem:[%s3811_s30 + $0x70] sm:$0xff] %vm2647_vm3, %v2645_v12 }
 0x180 PF: > { %2666 = sbr.rel (!%p3804_p9) target bundleno = 393 (0x189), region = 40  ;;  %vm2667_vm4 = vcmask (%p3804_p9), 64512   ;;  %v3745_v17 = vmov (%p3804_p9), 0.0  }
 0x181   : > { %2668 = vst.msk [vmem:[%s3811_s30] sm:$0xff] (%p3804_p9), %vm2667_vm4, %v3745_v17  ;;  %2669 = vst.msk [vmem:[%s3811_s30 + $0x8] sm:$0xff] (%p3804_p9), %vm2667_vm4, %v3745_v17 }
 0x182   : > { %2670 = vst.msk [vmem:[%s3811_s30 + $0x10] sm:$0xff] (%p3804_p9), %vm2667_vm4, %v3745_v17  ;;  %2671 = vst.msk [vmem:[%s3811_s30 + $0x18] sm:$0xff] (%p3804_p9), %vm2667_vm4, %v3745_v17 }
 0x183   : > { %2672 = vst.msk [vmem:[%s3811_s30 + $0x20] sm:$0xff] (%p3804_p9), %vm2667_vm4, %v3745_v17  ;;  %2673 = vst.msk [vmem:[%s3811_s30 + $0x28] sm:$0xff] (%p3804_p9), %vm2667_vm4, %v3745_v17 }
 0x184   : > { %2674 = vst.msk [vmem:[%s3811_s30 + $0x30] sm:$0xff] (%p3804_p9), %vm2667_vm4, %v3745_v17  ;;  %2675 = vst.msk [vmem:[%s3811_s30 + $0x38] sm:$0xff] (%p3804_p9), %vm2667_vm4, %v3745_v17 }
 0x185   : > { %2676 = vst.msk [vmem:[%s3811_s30 + $0x40] sm:$0xff] (%p3804_p9), %vm2667_vm4, %v3745_v17  ;;  %2677 = vst.msk [vmem:[%s3811_s30 + $0x48] sm:$0xff] (%p3804_p9), %vm2667_vm4, %v3745_v17 }
 0x186   : > { %2678 = vst.msk [vmem:[%s3811_s30 + $0x50] sm:$0xff] (%p3804_p9), %vm2667_vm4, %v3745_v17  ;;  %2679 = vst.msk [vmem:[%s3811_s30 + $0x58] sm:$0xff] (%p3804_p9), %vm2667_vm4, %v3745_v17 }
 0x187   : > { %2680 = vst.msk [vmem:[%s3811_s30 + $0x60] sm:$0xff] %vm2667_vm4, %v3745_v17  ;;  %2681 = vst.msk [vmem:[%s3811_s30 + $0x68] sm:$0xff] %vm2667_vm4, %v3745_v17 }
 0x188   : > { %2682 = vst.msk [vmem:[%s3811_s30 + $0x70] sm:$0xff] %vm2667_vm4, %v3745_v17  ;;  %2683 = vst.msk [vmem:[%s3811_s30 + $0x78] sm:$0xff] %vm2667_vm4, %v3745_v17 }
 0x189 PF: > { %s13_s16 = sadd.s32 1, %s3743_s16   ;;  %s4444_s12 = smov %s3735_s14 }
 0x18a   : > { %p10_p10 = scmp.ge.s32.totalorder %s13_s16, 8   ;;  %s4445_s13 = smov %s3739_s15 }
 0x18b   : > { %s4446_s14 = smov %s4449_s17  ;;  %s4447_s15 = smov %s4453_s18 }
 0x18c   :  { %12 = sbr.rel (!%p10_p10) target bundleno = 3 (0x3), region = 93 }

// kernel: down_block2.5
= control target key start
LH: loop header
LB: loop body
LE: loop exit
PB: predicated region body
PF: predicated region fallthrough
CT: control target
= control target key end

     0   :  { %s3728_s12 = smov 0   ;;  %s3730_s13 = smov 0   ;;  %s4377_s0 = inlined_call_operand.vmem [shape: f32[2,384,8], index: 0, kind: input, shape index: {}]   ;;  %s4378_s1 = inlined_call_operand.vmem [shape: f32[9,8,8], index: 1, kind: input, shape index: {}]   ;;  %s4379_s2 = inlined_call_operand.vmem [shape: f32[1,8], index: 2, kind: input, shape index: {}]   ;;  %s4380_s3 = inlined_call_operand.vmem [shape: f32[2,384,8], index: 3, kind: output, shape index: {}]  }
   0x1   :  { %s3732_s14 = smov 0   ;;  %s3734_s15 = smov 0  }
   0x2   :  { %s3736_s16 = smov 0  }
   0x3 LB: > { %s25_s17 = sadd.s32 1, %s3697_s14  ;;  %s32_s18 = sadd.s32 1, %s3701_s15  ;;  %s3705_s16 = sphi %s3736_s16, %s13_s16   ;;  %s3701_s15 = sphi %s3734_s15, %s4393_s15   ;;  %s3697_s14 = sphi %s3732_s14, %s4392_s14   ;;  %s3693_s13 = sphi %s3730_s13, %s4391_s13   ;;  %s3689_s12 = sphi %s3728_s12, %s4390_s12  }
   0x4   : > { %p26_p0 = scmp.ge.s32.totalorder %s25_s17, 3  ;;  %p2811_p1 = scmp.ge.s32.totalorder %s3705_s16, 1 }
   0x5   : > { %p177_p2 = scmp.lt.s32.totalorder %s3705_s16, 7 }
   0x6   : > { %s4395_s17 = smov (%p26_p0, %s25_s17), 0  ;;  %s4397_s18 = smov (!%p26_p0, %s32_s18), %s3701_s15 }
   0x7   : > { %p178_p3 = pnand %p2811_p1, %p177_p2  ;;  %p34_p4 = scmp.ge.s32.totalorder %s4397_s18, 2 }
   0x8   : > { %p215_p5 = scmp.lt.s32.totalorder (!%p178_p3), %s3693_s13, 1  ;;  %s2813_s19 = sshll.u32 (!%p178_p3), %s3689_s12, 4 }
   0x9   : > { %s4399_s18 = smov (%p34_p4, %s4397_s18), 0  ;;  %181 = sbr.rel (%p178_p3) target bundleno = 393 (0x189), region = 32 }
   0xa   : > { %p230_p6 = scmp.lt.s32.totalorder (!%p178_p3), %s2813_s19, 47  ;;  %p240_p7 = scmp.ge.s32.totalorder (!%p178_p3), %s3689_s12, 1 }
   0xb   : > { %p241_p8 = scmp.lt.s32.totalorder (!%p178_p3), %s3689_s12, 2 }
   0xd   : > { %p3766_p9 = pnand (!%p178_p3), %p241_p8, %p240_p7 }
  0x10   : > { %s4401_s13 = smov (!%p215_p5, %s3693_s13), 1  ;;  %s4403_s19 = smov (!%p230_p6, %s2813_s19), 47 }
  0x11   : > { %s3624_s20 = smul.u32 384, %s4401_s13  ;;  %v2850_v0 = vld [vmem:[%s4378_s1 + $0x8] sm:$0xff] (!%p3766_p9)  ;;  %v3783_v1 = vld [vmem:[%s4378_s1 + $0x20] sm:$0xff] (!%p3766_p9)  ;;  %s2815_s8 = sshll.u32 (!%p3766_p9), %s3689_s12, 7  ;;  %vm286_vm0 = vcmask (!%p3766_p9), 64512   ;;  %v3019_v9 = vld [vmem:[%s4378_s1 + $0x30] sm:$0xff] (!%p3766_p9) }
  0x12   : > { %s3625_s21 = smul.u32 48, %s4401_s13  ;;  %v265_v2 = vld [vmem:[%s4378_s1] sm:$0xff] (!%p3766_p9)  ;;  %3260 = vmatprep.subr.mxu1 (!%p3766_p9), %v2850_v0  ;;  %3364 = vmatprep.subr.mxu0 (!%p3766_p9), %v3783_v1  ;;  %v2985_v3 = vld [vmem:[%s4378_s1 + $0x28] sm:$0xff] (!%p3766_p9)  ;;  %v3813_v10 = vld [vmem:[%s4378_s1 + $0x10] sm:$0xff] (!%p3766_p9) }
  0x13   : > { %s219_s24 = scalar_lea.vmem %s4377_s0, %s3624_s20  ;;  %245 = sbr.rel (%p3766_p9) target bundleno = 384 (0x180), region = 36  ;;  %3261 = vmatpush3.msra.mxu1 (!%p3766_p9), %v2850_v0  ;;  %3365 = vmatpush3.msra.mxu0 (!%p3766_p9), %v3783_v1  ;;  %v3872_v20 = vld [vmem:[%s4378_s1 + $0x38] sm:$0xff] (!%p3766_p9)  ;;  %v3087_v51 = vld [vmem:[%s4378_s1 + $0x40] sm:$0xff] (!%p3766_p9) }
  0x14   : > { %s236_s26 = sadd.s32 %s3625_s21, %s4403_s19  ;;  %s3790_s11 = scalar_lea.vmem (!%p3766_p9), %s219_s24, %s2815_s8  ;;  %3286 = vmatprep.subr.mxu1 (!%p3766_p9), %v265_v2  ;;  %3390 = vmatprep.subr.mxu0 (!%p3766_p9), %v2985_v3  ;;  %v2934_v37 = vld [vmem:[%s4378_s1 + $0x18] sm:$0xff] (!%p3766_p9) }
  0x15   : > { %s2814_s27 = sshll.u32 %s236_s26, 3  ;;  %v2834_v4 = vld [vmem:[%s3790_s11 - $0x10] sm:$0xff] (!%p3766_p9)  ;;  %v1132_v5 = vld [vmem:[%s3790_s11] sm:$0xff] (!%p3766_p9)  ;;  %v2835_v6 = vld [vmem:[%s3790_s11 - $0x8] sm:$0xff] (!%p3766_p9) }
  0x16   : > { %s3773_s30 = scalar_lea.vmem %s4380_s3, %s2814_s27  ;;  %3262 = vmatprep.mubr.msk.f32.mxu1 (!%p3766_p9), %vm286_vm0, %v2834_v4  ;;  %v1133_v7 = vld [vmem:[%s3790_s11 + $0x8] sm:$0xff] (!%p3766_p9)  ;;  %3366 = vmatprep.mubr.msk.f32.mxu0 (!%p3766_p9), %vm286_vm0, %v1132_v5  ;;  %v3803_v8 = vld [vmem:[%s3790_s11 + $0x10] sm:$0xff] (!%p3766_p9)  ;;  %v3816_v11 = vld [vmem:[%s3790_s11 + $0x18] sm:$0xff] (!%p3766_p9) }
  0x17   : > { %3263 = vmatmul.mubr.msk.f32.vlgmr.msra.gmra.mrb[0].mxu1 (!%p3766_p9), %vm286_vm0, %v2835_v6  ;;  %3367 = vmatmul.mubr.msk.f32.vlgmr.msra.gmra.mrb[0].mxu0 (!%p3766_p9), %vm286_vm0, %v1133_v7  ;;  %v3822_v12 = vld [vmem:[%s3790_s11 + $0x20] sm:$0xff] (!%p3766_p9)  ;;  %v3833_v13 = vld [vmem:[%s3790_s11 + $0x28] sm:$0xff] (!%p3766_p9)  ;;  %v3836_v14 = vld [vmem:[%s3790_s11 + $0x30] sm:$0xff] (!%p3766_p9) }
  0x18   : > { %3287 = vmatpush3.msra.mxu1 (!%p3766_p9), %v265_v2  ;;  %3391 = vmatpush3.msra.mxu0 (!%p3766_p9), %v2985_v3  ;;  %v3847_v15 = vld [vmem:[%s3790_s11 + $0x38] sm:$0xff] (!%p3766_p9)  ;;  %v3850_v16 = vld [vmem:[%s3790_s11 + $0x1] sm:$0xff] (!%p3766_p9)  ;;  %v3861_v17 = vld [vmem:[%s3790_s11 + $0x9] sm:$0xff] (!%p3766_p9) }
  0x19   : > { %3265 = vmatprep.mubr.msk.f32.mxu1 (!%p3766_p9), %vm286_vm0, %v1132_v5  ;;  %3369 = vmatprep.mubr.msk.f32.mxu0 (!%p3766_p9), %vm286_vm0, %v3803_v8  ;;  %v3864_v18 = vld [vmem:[%s3790_s11 + $0x40] sm:$0xff] (!%p3766_p9)  ;;  %v3867_v19 = vld [vmem:[%s3790_s11 + $0x11] sm:$0xff] (!%p3766_p9)  ;;  %v3881_v21 = vld [vmem:[%s3790_s11 + $0x48] sm:$0xff] (!%p3766_p9) }
  0x1a   : > { %3416 = vmatprep.subr.mxu0 %v3019_v9  ;;  %3312 = vmatprep.subr.mxu1 %v3813_v10  ;;  %v3884_v22 = vld [vmem:[%s3790_s11 + $0x19] sm:$0xff]  ;;  %v3889_v23 = vld [vmem:[%s3790_s11 + $0x50] sm:$0xff]  ;;  %v3892_v24 = vld [vmem:[%s3790_s11 + $0x21] sm:$0xff] }
  0x1b   : > { %3266 = vmatmul.mubr.msk.f32.gmra.mrb[2].mxu1 %vm286_vm0, %v1133_v7  ;;  %3370 = vmatmul.mubr.msk.f32.gmra.mrb[2].mxu0 %vm286_vm0, %v3816_v11  ;;  %v3904_v25 = vld [vmem:[%s3790_s11 + $0x58] sm:$0xff]  ;;  %v3907_v26 = vld [vmem:[%s3790_s11 + $0x29] sm:$0xff]  ;;  %v3910_v27 = vld [vmem:[%s3790_s11 + $0x60] sm:$0xff] }
  0x1c   : > { %3268 = vmatprep.mubr.msk.f32.mxu1 %vm286_vm0, %v3803_v8  ;;  %3372 = vmatprep.mubr.msk.f32.mxu0 %vm286_vm0, %v3822_v12  ;;  %v3913_v28 = vld [vmem:[%s3790_s11 + $0x31] sm:$0xff]  ;;  %v3924_v29 = vld [vmem:[%s3790_s11 + $0x68] sm:$0xff]  ;;  %v3927_v30 = vld [vmem:[%s3790_s11 + $0x39] sm:$0xff] }
  0x1d   : > { %v2817_v31 = vld [vmem:[%s3790_s11 - $0x11] sm:$0xff]  ;;  %v3931_v32 = vld [vmem:[%s3790_s11 + $0x41] sm:$0xff]  ;;  %v2818_v33 = vld [vmem:[%s3790_s11 - $0x9] sm:$0xff] }
  0x1e   : > { %v3942_v34 = vld [vmem:[%s3790_s11 + $0x49] sm:$0xff]  ;;  %v3945_v35 = vld [vmem:[%s3790_s11 - $0x1] sm:$0xff]  ;;  %v3948_v36 = vld [vmem:[%s3790_s11 + $0x51] sm:$0xff] }
  0x1f   : > { %3269 = vmatmul.mubr.msk.f32.gmra.mrb[4].mxu1 %vm286_vm0, %v3816_v11  ;;  %3373 = vmatmul.mubr.msk.f32.gmra.mrb[4].mxu0 %vm286_vm0, %v3833_v13  ;;  %v3960_v38 = vld [vmem:[%s3790_s11 + $0x7] sm:$0xff]  ;;  %v3963_v39 = vld [vmem:[%s3790_s11 + $0x59] sm:$0xff]  ;;  %v3968_v40 = vld [vmem:[%s3790_s11 + $0xf] sm:$0xff] }
  0x20   : > { %3271 = vmatprep.mubr.msk.f32.mxu1 %vm286_vm0, %v3822_v12  ;;  %3375 = vmatprep.mubr.msk.f32.mxu0 %vm286_vm0, %v3836_v14  ;;  %v3971_v41 = vld [vmem:[%s3790_s11 + $0x61] sm:$0xff]  ;;  %v3982_v42 = vld [vmem:[%s3790_s11 + $0x17] sm:$0xff]  ;;  %v3985_v43 = vld [vmem:[%s3790_s11 + $0x69] sm:$0xff] }
  0x21   : > { %v3988_v44 = vld [vmem:[%s3790_s11 + $0x1f] sm:$0xff]  ;;  %v3991_v45 = vld [vmem:[%s3790_s11 + $0x71] sm:$0xff]  ;;  %v4002_v46 = vld [vmem:[%s3790_s11 + $0x27] sm:$0xff] }
  0x22   : > { %v4005_v47 = vld [vmem:[%s3790_s11 + $0x79] sm:$0xff]  ;;  %v4008_v48 = vld [vmem:[%s3790_s11 + $0x2f] sm:$0xff]  ;;  %v4035_v52 = vld [vmem:[%s3790_s11 + $0x47] sm:$0xff] }
  0x23   : > { %3272 = vmatmul.mubr.msk.f32.gmra.mrb[6].mxu1 %vm286_vm0, %v3833_v13  ;;  %3376 = vmatmul.mubr.msk.f32.gmra.mrb[6].mxu0 %vm286_vm0, %v3847_v15  ;;  %v4019_v49 = vld [vmem:[%s3790_s11 + $0x37] sm:$0xff]  ;;  %v4022_v50 = vld [vmem:[%s3790_s11 + $0x3f] sm:$0xff]  ;;  %v4040_v53 = vld [vmem:[%s3790_s11 + $0x4f] sm:$0xff] }
  0x24   : > { %3274 = vmatprep.mubr.msk.f32.mxu1 %vm286_vm0, %v3836_v14  ;;  %3392 = vmatprep.mubr.msk.f32.mxu0 %vm286_vm0, %v3850_v16  ;;  %v4051_v54 = vld [vmem:[%s3790_s11 + $0x57] sm:$0xff]  ;;  %v4054_v55 = vld [vmem:[%s3790_s11 + $0x5f] sm:$0xff]  ;;  %v4065_v56 = vld [vmem:[%s3790_s11 + $0x67] sm:$0xff] }
  0x25   : > { %v2884_v57 = vld [vmem:[%s3790_s11 - $0xf] sm:$0xff]  ;;  %v2885_v58 = vld [vmem:[%s3790_s11 - $0x7] sm:$0xff]  ;;  %v3018_v62 = vld [vmem:[%s3790_s11 + $0x87] sm:$0xff] }
  0x26   : > { %v4084_v59 = vld [vmem:[%s3790_s11 + $0x6f] sm:$0xff]  ;;  %v3016_v60 = vld [vmem:[%s3790_s11 + $0x77] sm:$0xff]  ;;  %v3017_v61 = vld [vmem:[%s3790_s11 + $0x7f] sm:$0xff] }
  0x27   : > { %3275 = vmatmul.mubr.msk.f32.gmra.mrb[8].mxu1 %vm286_vm0, %v3847_v15  ;;  %3393 = vmatmul.mubr.msk.f32.vlgmr.msra.gmra.mrb[0].mxu0 %vm286_vm0, %v3861_v17  ;;  %v3049_v63 = vld [vmem:[%s3790_s11 + $0x70] sm:$0xff]  ;;  %v3050_v0 = vld [vmem:[%s3790_s11 + $0x78] sm:$0xff]  ;;  %v3052_v2 = vld [vmem:[%s3790_s11 + $0x88] sm:$0xff] }
  0x28   : > { %3417 = vmatpush3.msra.mxu0 %v3019_v9  ;;  %3277 = vmatprep.mubr.msk.f32.mxu1 %vm286_vm0, %v3864_v18  ;;  %v3085_v3 = vld [vmem:[%s3790_s11 + $0x81] sm:$0xff]  ;;  %v3086_v4 = vld [vmem:[%s3790_s11 + $0x89] sm:$0xff] }
  0x29   : > { %3395 = vmatprep.mubr.msk.f32.mxu0 %vm286_vm0, %v3867_v19  ;;  %3442 = vmatprep.subr.mxu0 %v3872_v20 }
  0x2b   : > { %3278 = vmatmul.mubr.msk.f32.gmra.mrb[10].mxu1 %vm286_vm0, %v3881_v21  ;;  %3396 = vmatmul.mubr.msk.f32.gmra.mrb[2].mxu0 %vm286_vm0, %v3884_v22 }
  0x2c   : > { %3280 = vmatprep.mubr.msk.f32.mxu1 %vm286_vm0, %v3889_v23  ;;  %3398 = vmatprep.mubr.msk.f32.mxu0 %vm286_vm0, %v3892_v24 }
  0x2f   : > { %3281 = vmatmul.mubr.msk.f32.gmra.mrb[12].mxu1 %vm286_vm0, %v3904_v25  ;;  %3399 = vmatmul.mubr.msk.f32.gmra.mrb[4].mxu0 %vm286_vm0, %v3907_v26 }
  0x30   : > { %3283 = vmatprep.mubr.msk.f32.mxu1 %vm286_vm0, %v3910_v27  ;;  %3401 = vmatprep.mubr.msk.f32.mxu0 %vm286_vm0, %v3913_v28 }
  0x33   : > { %3284 = vmatmul.mubr.msk.f32.gmra.mrb[14].mxu1 %vm286_vm0, %v3924_v29  ;;  %3402 = vmatmul.mubr.msk.f32.gmra.mrb[6].mxu0 %vm286_vm0, %v3927_v30 }
  0x34   : > { %3288 = vmatprep.mubr.msk.f32.mxu1 %vm286_vm0, %v2817_v31  ;;  %3404 = vmatprep.mubr.msk.f32.mxu0 %vm286_vm0, %v3931_v32 }
  0x37   : > { %3289 = vmatmul.mubr.msk.f32.vlgmr.msra.gmra.mrb[0].mxu1 %vm286_vm0, %v2818_v33  ;;  %3405 = vmatmul.mubr.msk.f32.gmra.mrb[8].mxu0 %vm286_vm0, %v3942_v34 }
  0x38   : > { %3313 = vmatpush3.msra.mxu1 %v3813_v10  ;;  %3291 = vmatprep.mubr.msk.f32.mxu1 %vm286_vm0, %v3945_v35 }
  0x39   : > { %3407 = vmatprep.mubr.msk.f32.mxu0 %vm286_vm0, %v3948_v36  ;;  %3338 = vmatprep.subr.mxu1 %v2934_v37 }
  0x3b   : > { %3292 = vmatmul.mubr.msk.f32.gmra.mrb[2].mxu1 %vm286_vm0, %v3960_v38  ;;  %3408 = vmatmul.mubr.msk.f32.gmra.mrb[10].mxu0 %vm286_vm0, %v3963_v39 }
  0x3c   : > { %3294 = vmatprep.mubr.msk.f32.mxu1 %vm286_vm0, %v3968_v40  ;;  %3410 = vmatprep.mubr.msk.f32.mxu0 %vm286_vm0, %v3971_v41 }
  0x3f   : > { %3295 = vmatmul.mubr.msk.f32.gmra.mrb[4].mxu1 %vm286_vm0, %v3982_v42  ;;  %3411 = vmatmul.mubr.msk.f32.gmra.mrb[12].mxu0 %vm286_vm0, %v3985_v43 }
  0x40   : > { %3297 = vmatprep.mubr.msk.f32.mxu1 %vm286_vm0, %v3988_v44  ;;  %3413 = vmatprep.mubr.msk.f32.mxu0 %vm286_vm0, %v3991_v45 }
  0x43   : > { %3298 = vmatmul.mubr.msk.f32.gmra.mrb[6].mxu1 %vm286_vm0, %v4002_v46  ;;  %3414 = vmatmul.mubr.msk.f32.gmra.mrb[14].mxu0 %vm286_vm0, %v4005_v47 }
  0x44   : > { %3300 = vmatprep.mubr.msk.f32.mxu1 %vm286_vm0, %v4008_v48  ;;  %3418 = vmatprep.mubr.msk.f32.mxu0 %vm286_vm0, %v3968_v40 }
  0x47   : > { %3301 = vmatmul.mubr.msk.f32.gmra.mrb[8].mxu1 %vm286_vm0, %v4019_v49  ;;  %3419 = vmatmul.mubr.msk.f32.vlgmr.msra.gmra.mrb[0].mxu0 %vm286_vm0, %v3982_v42 }
  0x48   : > { %3443 = vmatpush3.msra.mxu0 %v3872_v20  ;;  %3303 = vmatprep.mubr.msk.f32.mxu1 %vm286_vm0, %v4022_v50 }
  0x49   : > { %3421 = vmatprep.mubr.msk.f32.mxu0 %vm286_vm0, %v3988_v44  ;;  %3468 = vmatprep.subr.mxu0 %v3087_v51 }
  0x4b   : > { %3304 = vmatmul.mubr.msk.f32.gmra.mrb[10].mxu1 %vm286_vm0, %v4035_v52  ;;  %3422 = vmatmul.mubr.msk.f32.gmra.mrb[2].mxu0 %vm286_vm0, %v4002_v46 }
  0x4c   : > { %3306 = vmatprep.mubr.msk.f32.mxu1 %vm286_vm0, %v4040_v53  ;;  %3424 = vmatprep.mubr.msk.f32.mxu0 %vm286_vm0, %v4008_v48 }
  0x4f   : > { %3307 = vmatmul.mubr.msk.f32.gmra.mrb[12].mxu1 %vm286_vm0, %v4051_v54  ;;  %3425 = vmatmul.mubr.msk.f32.gmra.mrb[4].mxu0 %vm286_vm0, %v4019_v49 }
  0x50   : > { %3309 = vmatprep.mubr.msk.f32.mxu1 %vm286_vm0, %v4054_v55  ;;  %3427 = vmatprep.mubr.msk.f32.mxu0 %vm286_vm0, %v4022_v50 }
  0x53   : > { %3310 = vmatmul.mubr.msk.f32.gmra.mrb[14].mxu1 %vm286_vm0, %v4065_v56  ;;  %3428 = vmatmul.mubr.msk.f32.gmra.mrb[6].mxu0 %vm286_vm0, %v4035_v52 }
  0x54   : > { %3314 = vmatprep.mubr.msk.f32.mxu1 %vm286_vm0, %v2884_v57  ;;  %3430 = vmatprep.mubr.msk.f32.mxu0 %vm286_vm0, %v4040_v53 }
  0x57   : > { %3315 = vmatmul.mubr.msk.f32.vlgmr.msra.gmra.mrb[0].mxu1 %vm286_vm0, %v2885_v58  ;;  %3431 = vmatmul.mubr.msk.f32.gmra.mrb[8].mxu0 %vm286_vm0, %v4051_v54 }
  0x58   : > { %3339 = vmatpush3.msra.mxu1 %v2934_v37  ;;  %3317 = vmatprep.mubr.msk.f32.mxu1 %vm286_vm0, %v3850_v16 }
  0x59   : > { %3433 = vmatprep.mubr.msk.f32.mxu0 %vm286_vm0, %v4054_v55  ;;  %3494 = vmatprep.subr.mxu1 %v3783_v1 }
  0x5b   : > { %3318 = vmatmul.mubr.msk.f32.gmra.mrb[2].mxu1 %vm286_vm0, %v3861_v17  ;;  %3434 = vmatmul.mubr.msk.f32.gmra.mrb[10].mxu0 %vm286_vm0, %v4065_v56  ;;  %v4239_v17 = vld [vmem:[%s4379_s2] ss:$0 sm:$0xff] }
  0x5c   : > { %3320 = vmatprep.mubr.msk.f32.mxu1 %vm286_vm0, %v3867_v19  ;;  %3436 = vmatprep.mubr.msk.f32.mxu0 %vm286_vm0, %v4084_v59 }
  0x5f   : > { %3321 = vmatmul.mubr.msk.f32.gmra.mrb[4].mxu1 %vm286_vm0, %v3884_v22  ;;  %3437 = vmatmul.mubr.msk.f32.gmra.mrb[12].mxu0 %vm286_vm0, %v3016_v60 }
  0x60   : > { %3323 = vmatprep.mubr.msk.f32.mxu1 %vm286_vm0, %v3892_v24  ;;  %3439 = vmatprep.mubr.msk.f32.mxu0 %vm286_vm0, %v3017_v61 }
  0x63   : > { %3324 = vmatmul.mubr.msk.f32.gmra.mrb[6].mxu1 %vm286_vm0, %v3907_v26  ;;  %3440 = vmatmul.mubr.msk.f32.gmra.mrb[14].mxu0 %vm286_vm0, %v3018_v62 }
  0x64   : > { %3326 = vmatprep.mubr.msk.f32.mxu1 %vm286_vm0, %v3913_v28  ;;  %3444 = vmatprep.mubr.msk.f32.mxu0 %vm286_vm0, %v3803_v8  ;;  %v2314_v8 = vlaneseq }
  0x67   : > { %3327 = vmatmul.mubr.msk.f32.gmra.mrb[8].mxu1 %vm286_vm0, %v3927_v30  ;;  %3445 = vmatmul.mubr.msk.f32.vlgmr.msra.gmra.mrb[0].mxu0 %vm286_vm0, %v3816_v11  ;;  %v4233_v11 = vshrl.u32 %v2314_v8, 7 }
  0x68   : > { %3469 = vmatpush3.msra.mxu0 %v3087_v51  ;;  %3329 = vmatprep.mubr.msk.f32.mxu1 %vm286_vm0, %v3931_v32 }
  0x69   : > { %3447 = vmatprep.mubr.msk.f32.mxu0 %vm286_vm0, %v3822_v12 }
  0x6b   : > { %3330 = vmatmul.mubr.msk.f32.gmra.mrb[10].mxu1 %vm286_vm0, %v3942_v34  ;;  %3448 = vmatmul.mubr.msk.f32.gmra.mrb[2].mxu0 %vm286_vm0, %v3833_v13 }
  0x6c   : > { %3332 = vmatprep.mubr.msk.f32.mxu1 %vm286_vm0, %v3948_v36  ;;  %3450 = vmatprep.mubr.msk.f32.mxu0 %vm286_vm0, %v3836_v14  ;;  %v2316_v14 = vadd.s32 8, %v4233_v11 }
  0x6f   : > { %3333 = vmatmul.mubr.msk.f32.gmra.mrb[12].mxu1 %vm286_vm0, %v3963_v39  ;;  %3451 = vmatmul.mubr.msk.f32.gmra.mrb[4].mxu0 %vm286_vm0, %v3847_v15 }
  0x70   : > { %3335 = vmatprep.mubr.msk.f32.mxu1 %vm286_vm0, %v3971_v41  ;;  %3453 = vmatprep.mubr.msk.f32.mxu0 %vm286_vm0, %v3864_v18 }
  0x73   : > { %3336 = vmatmul.mubr.msk.f32.gmra.mrb[14].mxu1 %vm286_vm0, %v3985_v43  ;;  %3454 = vmatmul.mubr.msk.f32.gmra.mrb[6].mxu0 %vm286_vm0, %v3881_v21 }
  0x74   : > { %3340 = vmatprep.mubr.msk.f32.mxu1 %vm286_vm0, %v3945_v35  ;;  %3456 = vmatprep.mubr.msk.f32.mxu0 %vm286_vm0, %v3889_v23 }
  0x77   : > { %3341 = vmatmul.mubr.msk.f32.vlgmr.msra.gmra.mrb[0].mxu1 %vm286_vm0, %v3960_v38  ;;  %3457 = vmatmul.mubr.msk.f32.gmra.mrb[8].mxu0 %vm286_vm0, %v3904_v25 }
  0x78   : > { %3495 = vmatpush3.msra.mxu1 %v3783_v1  ;;  %3343 = vmatprep.mubr.msk.f32.mxu1 %vm286_vm0, %v3968_v40  ;;  %v3051_v1 = vld [vmem:[%s3790_s11 + $0x80] sm:$0xff] }
  0x79   : > { %3459 = vmatprep.mubr.msk.f32.mxu0 %vm286_vm0, %v3910_v27 }
  0x7b   : > { %3344 = vmatmul.mubr.msk.f32.gmra.mrb[2].mxu1 %vm286_vm0, %v3982_v42  ;;  %3460 = vmatmul.mubr.msk.f32.gmra.mrb[10].mxu0 %vm286_vm0, %v3924_v29 }
  0x7c   : > { %3346 = vmatprep.mubr.msk.f32.mxu1 %vm286_vm0, %v3988_v44  ;;  %3462 = vmatprep.mubr.msk.f32.mxu0 %vm286_vm0, %v3049_v63  ;;  %v2322_v44 = vadd.s32 56, %v4233_v11 }
  0x7e   : > { %v2384_v58 = vand.u32 15, %v2322_v44 }
  0x7f   : > { %3347 = vmatmul.mubr.msk.f32.gmra.mrb[4].mxu1 %vm286_vm0, %v4002_v46  ;;  %3463 = vmatmul.mubr.msk.f32.gmra.mrb[12].mxu0 %vm286_vm0, %v3050_v0 }
  0x80   : > { %3349 = vmatprep.mubr.msk.f32.mxu1 %vm286_vm0, %v4008_v48  ;;  %3465 = vmatprep.mubr.msk.f32.mxu0 %vm286_vm0, %v3051_v1  ;;  %v2321_v48 = vadd.s32 48, %v4233_v11  ;;  %vm2546_vm7 = vcmp.le.s32.totalorder %v2384_v58, 8 }
  0x83   : > { %3350 = vmatmul.mubr.msk.f32.gmra.mrb[6].mxu1 %vm286_vm0, %v4019_v49  ;;  %3466 = vmatmul.mubr.msk.f32.gmra.mrb[14].mxu0 %vm286_vm0, %v3052_v2 }
  0x84   : > { %3352 = vmatprep.mubr.msk.f32.mxu1 %vm286_vm0, %v4022_v50  ;;  %3470 = vmatprep.mubr.msk.f32.mxu0 %vm286_vm0, %v3867_v19  ;;  %v2318_v19 = vadd.s32 24, %v4233_v11 }
  0x87   : > { %3353 = vmatmul.mubr.msk.f32.gmra.mrb[8].mxu1 %vm286_vm0, %v4035_v52  ;;  %3471 = vmatmul.mubr.msk.f32.vlgmr.msra.gmra.mrb[0].mxu0 %vm286_vm0, %v3884_v22  ;;  %v2335_v22 = vand.u32 15, %v4233_v11 }
  0x88   : > { %3355 = vmatprep.mubr.msk.f32.mxu1 %vm286_vm0, %v4040_v53  ;;  %3473 = vmatprep.mubr.msk.f32.mxu0 %vm286_vm0, %v3892_v24 }
  0x89   : > { %vm2523_vm2 = vcmp.ge.s32.totalorder %v2335_v22, 1 }
  0x8b   : > { %3356 = vmatmul.mubr.msk.f32.gmra.mrb[10].mxu1 %vm286_vm0, %v4051_v54  ;;  %3474 = vmatmul.mubr.msk.f32.gmra.mrb[2].mxu0 %vm286_vm0, %v3907_v26  ;;  %v2320_v26 = vadd.s32 40, %v4233_v11 }
  0x8c   : > { %3358 = vmatprep.mubr.msk.f32.mxu1 %vm286_vm0, %v4054_v55  ;;  %3476 = vmatprep.mubr.msk.f32.mxu0 %vm286_vm0, %v3913_v28 }
  0x8f   : > { %3359 = vmatmul.mubr.msk.f32.gmra.mrb[12].mxu1 %vm286_vm0, %v4065_v56  ;;  %3477 = vmatmul.mubr.msk.f32.gmra.mrb[4].mxu0 %vm286_vm0, %v3927_v30  ;;  %v2356_v30 = vand.u32 15, %v2318_v19 }
  0x90   : > { %3361 = vmatprep.mubr.msk.f32.mxu1 %vm286_vm0, %v4084_v59  ;;  %3479 = vmatprep.mubr.msk.f32.mxu0 %vm286_vm0, %v3931_v32  ;;  %v2324_v59 = vadd.s32 72, %v4233_v11 }
  0x91   : > { %vm2542_vm3 = vcmp.le.s32.totalorder %v2356_v30, 8 }
  0x93   : > { %3362 = vmatmul.mubr.msk.f32.gmra.mrb[14].mxu1 %vm286_vm0, %v3016_v60  ;;  %3480 = vmatmul.mubr.msk.f32.gmra.mrb[6].mxu0 %vm286_vm0, %v3942_v34 }
  0x94   : > { %3378 = vmatprep.mubr.msk.f32.mxu1 %vm286_vm0, %v3864_v18  ;;  %3482 = vmatprep.mubr.msk.f32.mxu0 %vm286_vm0, %v3948_v36  ;;  %v2342_v18 = vand.u32 15, %v2316_v14 }
  0x96   : > { %vm2540_vm1 = vcmp.le.s32.totalorder %v2342_v18, 8 }
  0x97   : > { %3379 = vmatmul.mubr.msk.f32.vlgmr.msra.gmra.mrb[8].mxu1 %vm286_vm0, %v3881_v21  ;;  %3483 = vmatmul.mubr.msk.f32.gmra.mrb[8].mxu0 %vm286_vm0, %v3963_v39  ;;  %v2370_v39 = vand.u32 15, %v2320_v26 }
  0x98   : > { %3381 = vmatprep.mubr.msk.f32.mxu1 %vm286_vm0, %v3889_v23  ;;  %3485 = vmatprep.mubr.msk.f32.mxu0 %vm286_vm0, %v3971_v41  ;;  %v2317_v23 = vadd.s32 16, %v4233_v11 }
  0x99   : > { %vm4257_vm5 = vcmp.le.s32.totalorder %v2370_v39, 8 }
  0x9a   : > { %v2349_v34 = vand.u32 15, %v2317_v23 }
  0x9b   : > { %3382 = vmatmul.mubr.msk.f32.gmra.mrb[10].mxu1 %vm286_vm0, %v3904_v25  ;;  %3486 = vmatmul.mubr.msk.f32.gmra.mrb[10].mxu0 %vm286_vm0, %v3985_v43 }
  0x9c   : > { %3384 = vmatprep.mubr.msk.f32.mxu1 %vm286_vm0, %v3910_v27  ;;  %3488 = vmatprep.mubr.msk.f32.mxu0 %vm286_vm0, %v3991_v45  ;;  %v2319_v27 = vadd.s32 32, %v4233_v11  ;;  %vm2525_vm4 = vcmp.ge.s32.totalorder %v2349_v34, 1  ;;  %v2327_v34 = vadd.s32 96, %v4233_v11 }
  0x9e   : > { %v2363_v40 = vand.u32 15, %v2319_v27 }
  0x9f   : > { %3385 = vmatmul.mubr.msk.f32.gmra.mrb[12].mxu1 %vm286_vm0, %v3924_v29  ;;  %3489 = vmatmul.mubr.msk.f32.gmra.mrb[12].mxu0 %vm286_vm0, %v4005_v47 }
  0xa0   : > { %3387 = vmatprep.mubr.msk.f32.mxu1 %vm286_vm0, %v3049_v63  ;;  %3491 = vmatprep.mubr.msk.f32.mxu0 %vm286_vm0, %v3085_v3  ;;  %vm4261_vm6 = vcmp.ge.s32.totalorder %v2363_v40, 1  ;;  %v2377_v63 = vand.u32 15, %v2321_v48 }
  0xa2   : > { %vm2529_vm8 = vcmp.ge.s32.totalorder %v2377_v63, 1 }
  0xa3   : > { %3388 = vmatmul.mubr.msk.f32.gmra.mrb[14].mxu1 %vm286_vm0, %v3050_v0  ;;  %3492 = vmatmul.mubr.msk.f32.gmra.mrb[14].mxu0 %vm286_vm0, %v3086_v4  ;;  %v2323_v0 = vadd.s32 64, %v4233_v11 }
  0xa5   : > { %v2391_v18 = vand.u32 15, %v2323_v0 }
  0xa7   : > { %vm2531_vm10 = vcmp.ge.s32.totalorder %v2391_v18, 1 }
 0x14a   : > { %v3342_v5 = vpop.f32.mrb[0].mxu1 }
 0x14b   : > { %v1036_v6 = vpop.f32.mrb[1].mxu1 }
 0x14e   : > { %v3345_v7 = vpop.f32.mrb[2].mxu1 }
 0x14f   : > { %v1046_v9 = vpop.f32.mrb[3].mxu1 }
 0x152   : > { %v3348_v10 = vpop.f32.mrb[4].mxu1 }
 0x153   : > { %v1056_v12 = vpop.f32.mrb[5].mxu1 }
 0x156   : > { %v3351_v13 = vpop.f32.mrb[6].mxu1 }
 0x157   : > { %v1066_v15 = vpop.f32.mrb[7].mxu1 }
 0x15a   : > { %v3472_v16 = vpop.f32.mrb[0].mxu0 }
 0x15b   : > { %v3496_v20 = vadd.f32 %v3472_v16, %v3342_v5  ;;  %v2180_v21 = vpop.f32.mrb[1].mxu0  ;;  %v2326_v5 = vadd.s32 88, %v4233_v11 }
 0x15c   : > { %v3497_v24 = vadd.f32 %v2180_v21, %v1036_v6  ;;  %v2325_v6 = vadd.s32 80, %v4233_v11 }
 0x15d   : > { %v2283_v25 = vadd.f32 %v3496_v20, %v4239_v17  ;;  %v2412_v23 = vand.u32 15, %v2326_v5 }
 0x15e   : > { %v2282_v28 = vadd.f32 %v3497_v24, %v4239_v17  ;;  %v3475_v29 = vpop.f32.mrb[2].mxu0  ;;  %v2405_v24 = vand.u32 15, %v2325_v6 }
 0x15f   : > { %v2299_v31 = vmax.f32 %v2283_v25, 0.0  ;;  %v3498_v32 = vadd.f32 %v3475_v29, %v3345_v7  ;;  %v2190_v33 = vpop.f32.mrb[3].mxu0  ;;  %v2328_v29 = vadd.s32 104, %v4233_v11  ;;  %vm4293_vm11 = vcmp.le.s32.totalorder %v2412_v23, 8 }
 0x160   : > { %v2298_v35 = vmax.f32 %v2282_v28, 0.0  ;;  %v3499_v36 = vadd.f32 %v2190_v33, %v1046_v9  ;;  %vm4297_vm12 = vcmp.ge.s32.totalorder %v2405_v24, 1 }
 0x161   : > { %v2604_v37 = vsel %vm2540_vm1, %v2299_v31, 0.0  ;;  %v2285_v38 = vadd.f32 %v3498_v32, %v4239_v17 }
 0x162   : > { %2620 = vst.msk [vmem:[%s3773_s30 + $0x8] sm:$0xff] %vm286_vm0, %v2604_v37  ;;  %v2603_v41 = vsel %vm2523_vm2, %v2298_v35, 0.0  ;;  %v2284_v42 = vadd.f32 %v3499_v36, %v4239_v17  ;;  %v3478_v43 = vpop.f32.mrb[4].mxu0 }
 0x163   : > { %2619 = vst.msk [vmem:[%s3773_s30] sm:$0xff] %vm286_vm0, %v2603_v41  ;;  %v2301_v45 = vmax.f32 %v2285_v38, 0.0  ;;  %v3500_v46 = vadd.f32 %v3478_v43, %v3348_v10  ;;  %v2200_v47 = vpop.f32.mrb[5].mxu0 }
 0x164   : > { %v2300_v49 = vmax.f32 %v2284_v42, 0.0  ;;  %v3501_v50 = vadd.f32 %v2200_v47, %v1056_v12  ;;  %v2398_v12 = vand.u32 15, %v2324_v59 }
 0x165   : > { %v2606_v51 = vsel %vm2542_vm3, %v2301_v45, 0.0  ;;  %v2287_v52 = vadd.f32 %v3500_v46, %v4239_v17  ;;  %v2426_v45 = vand.u32 15, %v2328_v29  ;;  %v2330_v46 = vadd.s32 120, %v4233_v11 }
 0x166   : > { %2622 = vst.msk [vmem:[%s3773_s30 + $0x18] sm:$0xff] %vm286_vm0, %v2606_v51  ;;  %v2605_v55 = vsel %vm2525_vm4, %v2300_v49, 0.0  ;;  %v2286_v56 = vadd.f32 %v3501_v50, %v4239_v17  ;;  %v3481_v57 = vpop.f32.mrb[6].mxu0  ;;  %vm2548_vm9 = vcmp.le.s32.totalorder %v2398_v12, 8  ;;  %v2419_v51 = vand.u32 15, %v2327_v34 }
 0x167   : > { %2621 = vst.msk [vmem:[%s3773_s30 + $0x10] sm:$0xff] %vm286_vm0, %v2605_v55  ;;  %v2303_v60 = vmax.f32 %v2287_v52, 0.0  ;;  %v3502_v61 = vadd.f32 %v3481_v57, %v3351_v13  ;;  %v2210_v62 = vpop.f32.mrb[7].mxu0  ;;  %v2329_v52 = vadd.s32 112, %v4233_v11  ;;  %vm2552_vm13 = vcmp.le.s32.totalorder %v2426_v45, 8 }
 0x168   : > { %v2302_v1 = vmax.f32 %v2286_v56, 0.0  ;;  %v3503_v2 = vadd.f32 %v2210_v62, %v1066_v15  ;;  %vm2535_vm14 = vcmp.ge.s32.totalorder %v2419_v51, 1 }
 0x169   : > { %v2608_v3 = vsel %vm4257_vm5, %v2303_v60, 0.0  ;;  %v2289_v4 = vadd.f32 %v3502_v61, %v4239_v17  ;;  %v2440_v61 = vand.u32 15, %v2330_v46 }
 0x16a   : > { %2624 = vst.msk [vmem:[%s3773_s30 + $0x28] sm:$0xff] %vm286_vm0, %v2608_v3  ;;  %v2607_v7 = vsel %vm4261_vm6, %v2302_v1, 0.0  ;;  %v2288_v8 = vadd.f32 %v3503_v2, %v4239_v17  ;;  %v3380_v9 = vpop.f32.mrb[8].mxu1  ;;  %v3484_v10 = vpop.f32.mrb[8].mxu0  ;;  %v2433_v1 = vand.u32 15, %v2329_v52 }
 0x16b   : > { %2623 = vst.msk [vmem:[%s3773_s30 + $0x20] sm:$0xff] %vm286_vm0, %v2607_v7  ;;  %v2305_v13 = vmax.f32 %v2289_v4, 0.0  ;;  %v3504_v14 = vadd.f32 %v3484_v10, %v3380_v9  ;;  %v1304_v15 = vpop.f32.mrb[9].mxu1  ;;  %v2220_v16 = vpop.f32.mrb[9].mxu0  ;;  %vm2554_vm15 = vcmp.le.s32.totalorder %v2440_v61, 8 }
 0x16c   : > { %v2304_v19 = vmax.f32 %v2288_v8, 0.0  ;;  %v3505_v20 = vadd.f32 %v2220_v16, %v1304_v15  ;;  %vm2537_vm1 = vcmp.ge.s32.totalorder %v2433_v1, 1 }
 0x16d   : > { %v2610_v21 = vsel %vm2546_vm7, %v2305_v13, 0.0  ;;  %v2291_v22 = vadd.f32 %v3504_v14, %v4239_v17 }
 0x16e   : > { %2626 = vst.msk [vmem:[%s3773_s30 + $0x38] sm:$0xff] %vm286_vm0, %v2610_v21  ;;  %v2609_v25 = vsel %vm2529_vm8, %v2304_v19, 0.0  ;;  %v2290_v26 = vadd.f32 %v3505_v20, %v4239_v17  ;;  %v3383_v27 = vpop.f32.mrb[10].mxu1  ;;  %v3487_v28 = vpop.f32.mrb[10].mxu0 }
 0x16f   : > { %2625 = vst.msk [vmem:[%s3773_s30 + $0x30] sm:$0xff] %vm286_vm0, %v2609_v25  ;;  %v2307_v30 = vmax.f32 %v2291_v22, 0.0  ;;  %v3506_v31 = vadd.f32 %v3487_v28, %v3383_v27  ;;  %v1314_v32 = vpop.f32.mrb[11].mxu1  ;;  %v2230_v33 = vpop.f32.mrb[11].mxu0 }
 0x170   : > { %v2306_v35 = vmax.f32 %v2290_v26, 0.0  ;;  %v3507_v36 = vadd.f32 %v2230_v33, %v1314_v32 }
 0x171   : > { %v2612_v37 = vsel %vm2548_vm9, %v2307_v30, 0.0  ;;  %v2293_v38 = vadd.f32 %v3506_v31, %v4239_v17 }
 0x172   : > { %2628 = vst.msk [vmem:[%s3773_s30 + $0x48] sm:$0xff] %vm286_vm0, %v2612_v37  ;;  %v2611_v41 = vsel %vm2531_vm10, %v2306_v35, 0.0  ;;  %v2292_v42 = vadd.f32 %v3507_v36, %v4239_v17  ;;  %v3386_v43 = vpop.f32.mrb[12].mxu1  ;;  %v3490_v44 = vpop.f32.mrb[12].mxu0 }
 0x173   : > { %2627 = vst.msk [vmem:[%s3773_s30 + $0x40] sm:$0xff] %vm286_vm0, %v2611_v41  ;;  %v2309_v47 = vmax.f32 %v2293_v38, 0.0  ;;  %v3508_v48 = vadd.f32 %v3490_v44, %v3386_v43  ;;  %v1324_v49 = vpop.f32.mrb[13].mxu1  ;;  %v2240_v50 = vpop.f32.mrb[13].mxu0 }
 0x174   : > { %v2308_v53 = vmax.f32 %v2292_v42, 0.0  ;;  %v3509_v54 = vadd.f32 %v2240_v50, %v1324_v49 }
 0x175   : > { %v2614_v55 = vsel %vm4293_vm11, %v2309_v47, 0.0  ;;  %v2295_v56 = vadd.f32 %v3508_v48, %v4239_v17 }
 0x176   : > { %2630 = vst.msk [vmem:[%s3773_s30 + $0x58] sm:$0xff] %vm286_vm0, %v2614_v55  ;;  %v2613_v57 = vsel %vm4297_vm12, %v2308_v53, 0.0  ;;  %v2294_v58 = vadd.f32 %v3509_v54, %v4239_v17  ;;  %v3389_v59 = vpop.f32.mrb[14].mxu1  ;;  %v3493_v60 = vpop.f32.mrb[14].mxu0 }
 0x177   : > { %2629 = vst.msk [vmem:[%s3773_s30 + $0x50] sm:$0xff] %vm286_vm0, %v2613_v57  ;;  %v2311_v11 = vmax.f32 %v2295_v56, 0.0  ;;  %v3510_v62 = vadd.f32 %v3493_v60, %v3389_v59  ;;  %v1334_v63 = vpop.f32.mrb[15].mxu1  ;;  %v2250_v0 = vpop.f32.mrb[15].mxu0 }
 0x178   : > { %v2310_v2 = vmax.f32 %v2294_v58, 0.0  ;;  %v3511_v3 = vadd.f32 %v2250_v0, %v1334_v63 }
 0x179   : > { %v2616_v4 = vsel %vm2552_vm13, %v2311_v11, 0.0  ;;  %v2297_v5 = vadd.f32 %v3510_v62, %v4239_v17 }
 0x17a   : > { %2632 = vst.msk [vmem:[%s3773_s30 + $0x68] sm:$0xff] %vm286_vm0, %v2616_v4  ;;  %v2615_v6 = vsel %vm2535_vm14, %v2310_v2, 0.0  ;;  %v2296_v7 = vadd.f32 %v3511_v3, %v4239_v17 }
 0x17b   : > { %2631 = vst.msk [vmem:[%s3773_s30 + $0x60] sm:$0xff] %vm286_vm0, %v2615_v6  ;;  %v2313_v8 = vmax.f32 %v2297_v5, 0.0 }
 0x17c   : > { %v2312_v9 = vmax.f32 %v2296_v7, 0.0 }
 0x17d   : > { %v2618_v10 = vsel %vm2554_vm15, %v2313_v8, 0.0 }
 0x17e   : > { %2634 = vst.msk [vmem:[%s3773_s30 + $0x78] sm:$0xff] %vm286_vm0, %v2618_v10  ;;  %v2617_v12 = vsel %vm2537_vm1, %v2312_v9, 0.0 }
 0x17f   : > { %2633 = vst.msk [vmem:[%s3773_s30 + $0x70] sm:$0xff] %vm286_vm0, %v2617_v12 }
 0x180 PF: > { %2637 = sbr.rel (!%p3766_p9) target bundleno = 393 (0x189), region = 40  ;;  %vm2638_vm2 = vcmask (%p3766_p9), 64512   ;;  %v3707_v17 = vmov (%p3766_p9), 0.0  }
 0x181   : > { %2639 = vst.msk [vmem:[%s3773_s30] sm:$0xff] (%p3766_p9), %vm2638_vm2, %v3707_v17  ;;  %2640 = vst.msk [vmem:[%s3773_s30 + $0x8] sm:$0xff] (%p3766_p9), %vm2638_vm2, %v3707_v17 }
 0x182   : > { %2641 = vst.msk [vmem:[%s3773_s30 + $0x10] sm:$0xff] (%p3766_p9), %vm2638_vm2, %v3707_v17  ;;  %2642 = vst.msk [vmem:[%s3773_s30 + $0x18] sm:$0xff] (%p3766_p9), %vm2638_vm2, %v3707_v17 }
 0x183   : > { %2643 = vst.msk [vmem:[%s3773_s30 + $0x20] sm:$0xff] (%p3766_p9), %vm2638_vm2, %v3707_v17  ;;  %2644 = vst.msk [vmem:[%s3773_s30 + $0x28] sm:$0xff] (%p3766_p9), %vm2638_vm2, %v3707_v17 }
 0x184   : > { %2645 = vst.msk [vmem:[%s3773_s30 + $0x30] sm:$0xff] (%p3766_p9), %vm2638_vm2, %v3707_v17  ;;  %2646 = vst.msk [vmem:[%s3773_s30 + $0x38] sm:$0xff] (%p3766_p9), %vm2638_vm2, %v3707_v17 }
 0x185   : > { %2647 = vst.msk [vmem:[%s3773_s30 + $0x40] sm:$0xff] (%p3766_p9), %vm2638_vm2, %v3707_v17  ;;  %2648 = vst.msk [vmem:[%s3773_s30 + $0x48] sm:$0xff] (%p3766_p9), %vm2638_vm2, %v3707_v17 }
 0x186   : > { %2649 = vst.msk [vmem:[%s3773_s30 + $0x50] sm:$0xff] (%p3766_p9), %vm2638_vm2, %v3707_v17  ;;  %2650 = vst.msk [vmem:[%s3773_s30 + $0x58] sm:$0xff] (%p3766_p9), %vm2638_vm2, %v3707_v17 }
 0x187   : > { %2651 = vst.msk [vmem:[%s3773_s30 + $0x60] sm:$0xff] %vm2638_vm2, %v3707_v17  ;;  %2652 = vst.msk [vmem:[%s3773_s30 + $0x68] sm:$0xff] %vm2638_vm2, %v3707_v17 }
 0x188   : > { %2653 = vst.msk [vmem:[%s3773_s30 + $0x70] sm:$0xff] %vm2638_vm2, %v3707_v17  ;;  %2654 = vst.msk [vmem:[%s3773_s30 + $0x78] sm:$0xff] %vm2638_vm2, %v3707_v17 }
 0x189 PF: > { %s13_s16 = sadd.s32 1, %s3705_s16   ;;  %s4390_s12 = smov %s3697_s14 }
 0x18a   : > { %p10_p10 = scmp.ge.s32.totalorder %s13_s16, 8   ;;  %s4391_s13 = smov %s3701_s15 }
 0x18b   : > { %s4392_s14 = smov %s4395_s17  ;;  %s4393_s15 = smov %s4399_s18 }
 0x18c   :  { %12 = sbr.rel (!%p10_p10) target bundleno = 3 (0x3), region = 93 }

</bundles_post_ra>
